<compile_context>
chip_gen: v7x
topology: tpu7x:2x2x1
jax: 0.10.0
libtpu: 0.0.40
codegen_flags: <defaults>
</compile_context>

<pallas_src>
import functools

import jax
import jax.numpy as jnp
from jax import lax
from jax.experimental import pallas as pl
from jax.experimental.pallas import tpu as pltpu


def _cdiv(a, b):
    return -(-a // b)


def _round_up(x, m):
    return ((x + m - 1) // m) * m


def _vmem_capacity_bytes():
    """Physical VMEM per TensorCore; conservative fallback (v7x = 64 MiB)."""
    try:
        return int(pltpu.get_tpu_info().vmem_capacity_bytes)
    except Exception:
        return 64 << 20


def _pick_seq_chunk(tile_s):
    """Pooling sub-chunk so the in-kernel f32 upcast temp stays <=128 sublanes."""
    if tile_s <= 128:
        return tile_s
    for c in (128, 64, 32, 16, 8):
        if tile_s % c == 0:
            return c
    return tile_s


def _default_tiles(B, S, H, hs_itemsize, vmem_cap):
    """Pick tiles so the double-buffered hidden-state stream uses ~1/3 of VMEM."""
    budget = max(vmem_cap // 3, 8 << 20)
    tile_b = 16 if B >= 32 else 8
    # Keep >= 2 blocks on the "parallel" batch axis so v7x's 2nd TensorCore has work.
    if tile_b > 8 and _cdiv(B, tile_b) < 2:
        tile_b = 8
    tile_s = S if S <= 512 else 512
    while 2 * tile_b * tile_s * H * hs_itemsize > budget:
        if tile_s > 128:
            tile_s = max(128, ((tile_s // 2) // 128) * 128)
        elif tile_b > 8:
            tile_b //= 2
        elif tile_s > 8:
            tile_s = max(8, ((tile_s // 2) // 8) * 8)
        else:
            break
    return tile_b, tile_s


def _head_kernel(hs_ref, feat_ref,
                 w1_ref, b1_ref, w2_ref, b2_ref,            # feature_processor
                 w3t_ref, w3f_ref, b3_ref,                   # classifier[0] (split K)
                 w4_ref, b4_ref, w5_ref, b5_ref,             # classifier[3], classifier[6]
                 out_ref, acc_ref,
                 *, seq_len, tile_s, seq_chunk, mask_tail, inv_seq_len):
    s = pl.program_id(1)

    # --- init the per-batch-tile pooling accumulator on the first seq step ---
    @pl.when(s == 0)
    def _():
        acc_ref[...] = jnp.zeros_like(acc_ref)

    # --- chunked, masked mean-pool accumulation (f32) -------------------------
    # Static sub-slices keep the f32 upcast temporary to <= tile_b*seq_chunk*H.
    seq_base = s * tile_s
    partial = None
    for c in range(tile_s // seq_chunk):
        off = c * seq_chunk
        blk = hs_ref[:, off:off + seq_chunk, :].astype(jnp.float32)   # [TB, chunk, H]
        if mask_tail:
            pos = seq_base + off + lax.broadcasted_iota(
                jnp.int32, (1, seq_chunk, 1), 1)
            blk = jnp.where(pos < seq_len, blk, 0.0)                  # zero the seq tail
        csum = jnp.sum(blk, axis=1)                                   # [TB, H]
        partial = csum if partial is None else partial + csum
    acc_ref[...] += partial

    # --- on the last seq step: scale once by 1/S and run the tiny MLPs --------
    @pl.when(s == pl.num_programs(1) - 1)
    def _():
        text_emb = acc_ref[...] * inv_seq_len                         # [TB, H]

        # feature_processor: Linear(F,64) -> ReLU -> (Dropout) -> Linear(64,32)
        f = feat_ref[...].astype(jnp.float32)                         # [TB, F_pad]
        h1 = jnp.dot(f, w1_ref[...], preferred_element_type=jnp.float32) + b1_ref[...]
        h1 = jnp.maximum(h1, 0.0)
        feat_emb = jnp.dot(h1, w2_ref[...], preferred_element_type=jnp.float32) + b2_ref[...]

        # classifier: concat-free first layer via split weights (w3 = [w3_text; w3_feat])
        c1 = (jnp.dot(text_emb, w3t_ref[...], preferred_element_type=jnp.float32)
              + jnp.dot(feat_emb, w3f_ref[...], preferred_element_type=jnp.float32)
              + b3_ref[...])
        c1 = jnp.maximum(c1, 0.0)
        c2 = jnp.dot(c1, w4_ref[...], preferred_element_type=jnp.float32) + b4_ref[...]
        c2 = jnp.maximum(c2, 0.0)
        logits = jnp.dot(c2, w5_ref[...], preferred_element_type=jnp.float32) + b5_ref[...]
        out_ref[...] = logits.astype(out_ref.dtype)


def heading_classifier_forward(last_hidden_state, features, params,
                               *, tile_b=None, tile_s=None):
    """Mean-pool + feature MLP + classifier MLP in one pipelined Pallas kernel."""
    B, S, H = last_hidden_state.shape
    F = features.shape[1]
    C = params["w5"].shape[1]

    hs_itemsize = last_hidden_state.dtype.itemsize
    vmem_cap = _vmem_capacity_bytes()
    auto_tb, auto_ts = _default_tiles(B, S, H, hs_itemsize, vmem_cap)
    if tile_b is None:
        tile_b = auto_tb
    if tile_s is None:
        tile_s = auto_ts
    tile_s = min(tile_s, S)
    if tile_b % 8 != 0:
        raise ValueError("tile_b must be a multiple of 8")
    if tile_s != S and tile_s % 8 != 0:
        raise ValueError("tile_s must be a multiple of 8 or equal to S")

    b_tiles = _cdiv(B, tile_b)
    s_tiles = _cdiv(S, tile_s)
    B_pad = b_tiles * tile_b
    F_pad = _round_up(max(F, 128), 128)
    C_pad = _round_up(max(C, 128), 128)

    seq_chunk = _pick_seq_chunk(tile_s)
    mask_tail = (S % tile_s) != 0

    # Only the tiny side tensors are padded; the dominant [B,S,H] stream is
    # passed through untouched (no pad, no cast -> no extra HBM passes).
    feats = jnp.pad(features, ((0, B_pad - B), (0, F_pad - F)))

    w1 = jnp.pad(params["w1"], ((0, F_pad - F), (0, 0)))
    w3_text = params["w3"][:H]          # [H, 256]
    w3_feat = params["w3"][H:]          # [32, 256]
    w5 = jnp.pad(params["w5"], ((0, 0), (0, C_pad - C)))
    b5 = jnp.pad(params["b5"], ((0, 0), (0, C_pad - C)))
    weights = (w1, params["b1"], params["w2"], params["b2"],
               w3_text, w3_feat, params["b3"],
               params["w4"], params["b4"], w5, b5)

    # --- explicit VMEM budget: double-buffered streams + resident params + temps
    hs_blk = tile_b * tile_s * H * hs_itemsize
    feat_blk = tile_b * F_pad * feats.dtype.itemsize
    out_blk = tile_b * C_pad * 4
    w_bytes = sum(int(w.size) * w.dtype.itemsize for w in weights)
    temp = tile_b * seq_chunk * H * 4
    needed = (2 * hs_blk + 2 * feat_blk + 2 * out_blk + 2 * w_bytes
              + 2 * temp + tile_b * H * 4)
    vmem_limit = int(needed * 1.25) + (4 << 20)
    vmem_limit = max(vmem_limit, 16 << 20)
    vmem_limit = min(vmem_limit, (vmem_cap * 3) // 4, 100 << 20)

    def _const(b, s):                    # whole-array weight blocks: DMA'd once
        return (0, 0)

    # TODO(synk): if a profile on v7x shows exposed DMA with the 64 MiB-capped
    # tile, bump this BlockSpec to pipeline_mode=pl.Buffered(3).
    hs_spec = pl.BlockSpec((tile_b, tile_s, H), lambda b, s: (b, s, 0))
    feat_spec = pl.BlockSpec((tile_b, F_pad), lambda b, s: (b, 0))
    weight_specs = [pl.BlockSpec(w.shape, _const) for w in weights]
    out_spec = pl.BlockSpec((tile_b, C_pad), lambda b, s: (b, 0))

    kernel = functools.partial(
        _head_kernel, seq_len=S, tile_s=tile_s, seq_chunk=seq_chunk,
        mask_tail=mask_tail, inv_seq_len=1.0 / S)

    out_padded = pl.pallas_call(
        kernel,
        out_shape=jax.ShapeDtypeStruct((B_pad, C_pad), jnp.float32),
        grid_spec=pltpu.PrefetchScalarGridSpec(
            num_scalar_prefetch=0,
            grid=(b_tiles, s_tiles),
            in_specs=[hs_spec, feat_spec] + weight_specs,
            out_specs=out_spec,
            scratch_shapes=[pltpu.VMEM((tile_b, H), jnp.float32)],
        ),
        compiler_params=pltpu.CompilerParams(
            dimension_semantics=("parallel", "arbitrary"),
            vmem_limit_bytes=vmem_limit),
    )(last_hidden_state, feats, *weights)

    return out_padded[:B, :C]


def init_params(key, text_dim, feature_dim, num_classes):
    """Deterministic synthetic parameters (shapes match the nn.Module)."""
    ks = jax.random.split(key, 10)

    def lin(kw, kb, fan_in, fan_out):
        w = jax.random.normal(kw, (fan_in, fan_out), jnp.float32) * (1.0 / jnp.sqrt(fan_in))
        b = jax.random.normal(kb, (1, fan_out), jnp.float32) * 0.01
        return w, b

    w1, b1 = lin(ks[0], ks[1], feature_dim, 64)        # feature_processor[0]
    w2, b2 = lin(ks[2], ks[3], 64, 32)                 # feature_processor[3]
    w3, b3 = lin(ks[4], ks[5], text_dim + 32, 256)     # classifier[0]
    w4, b4 = lin(ks[6], ks[7], 256, 128)               # classifier[3]
    w5, b5 = lin(ks[8], ks[9], 128, num_classes)       # classifier[6]
    return dict(w1=w1, b1=b1, w2=w2, b2=b2, w3=w3, b3=b3,
                w4=w4, b4=b4, w5=w5, b5=b5)


def _reference(last_hidden_state, features, p):
    text_emb = jnp.mean(last_hidden_state, axis=1)
    h = jnp.maximum(features @ p["w1"] + p["b1"], 0.0)
    fe = h @ p["w2"] + p["b2"]
    c = jnp.concatenate([text_emb, fe], axis=1)
    c = jnp.maximum(c @ p["w3"] + p["b3"], 0.0)
    c = jnp.maximum(c @ p["w4"] + p["b4"], 0.0)
    return c @ p["w5"] + p["b5"]


if __name__ == "__main__":
    # Small synthetic shapes, ragged on purpose: B=10 -> 2 batch tiles of 8
    # (last one partial), S=28 -> tail-masked sequence tiles, H=32 stands in
    # for DistilBERT's 768.
    B, S, H, F, C = 10, 28, 32, 15, 5

    key = jax.random.PRNGKey(0)
    k_hs, k_feat, k_params = jax.random.split(key, 3)

    last_hidden_state = jax.random.normal(k_hs, (B, S, H), jnp.float32)
    features = jax.random.normal(k_feat, (B, F), jnp.float32)
    params = init_params(k_params, text_dim=H, feature_dim=F, num_classes=C)

    # f32 path with explicit small tiles: 4 seq steps (last one masked,
    # 28 % 8 = 4 valid rows) and a partial final batch tile (10 % 8 = 2).
    logits = heading_classifier_forward(last_hidden_state, features, params,
                                        tile_b=8, tile_s=8)
    logits = jax.block_until_ready(logits)
    ref = _reference(last_hidden_state, features, params)
    assert logits.shape == (B, C)
    assert jnp.allclose(logits, ref, atol=1e-4, rtol=1e-4), "f32 mismatch vs reference"

    # bf16 hidden-state path with automatic (VMEM-budgeted) tile selection;
    # pooling accumulation stays f32 inside the kernel.
    # TODO(synk): in production the text encoder should emit bf16 directly so
    # this cast is fused upstream rather than being a separate HBM pass.
    hs_bf16 = last_hidden_state.astype(jnp.bfloat16)
    logits_bf16 = heading_classifier_forward(hs_bf16, features, params)
    logits_bf16 = jax.block_until_ready(logits_bf16)
    ref_bf16 = _reference(hs_bf16.astype(jnp.float32), features, params)
    assert logits_bf16.shape == (B, C)
    assert jnp.allclose(logits_bf16, ref_bf16, atol=2e-2, rtol=2e-2), "bf16 mismatch vs reference"

    print("KERNEL_OK")
</pallas_src>

<mosaic_0001>
module attributes {stable_mosaic.version = 11 : i64} {
  func.func @_head_kernel(%arg0: i32, %arg1: i32, %arg2: memref<8x8x32xf32, #tpu.memory_space<vmem>>, %arg3: memref<8x128xf32, #tpu.memory_space<vmem>>, %arg4: memref<128x64xf32, #tpu.memory_space<vmem>>, %arg5: memref<1x64xf32, #tpu.memory_space<vmem>>, %arg6: memref<64x32xf32, #tpu.memory_space<vmem>>, %arg7: memref<1x32xf32, #tpu.memory_space<vmem>>, %arg8: memref<32x256xf32, #tpu.memory_space<vmem>>, %arg9: memref<32x256xf32, #tpu.memory_space<vmem>>, %arg10: memref<1x256xf32, #tpu.memory_space<vmem>>, %arg11: memref<256x128xf32, #tpu.memory_space<vmem>>, %arg12: memref<1x128xf32, #tpu.memory_space<vmem>>, %arg13: memref<128x128xf32, #tpu.memory_space<vmem>>, %arg14: memref<1x128xf32, #tpu.memory_space<vmem>>, %arg15: memref<8x128xf32, #tpu.memory_space<vmem>>, %arg16: memref<8x32xf32, #tpu.memory_space<vmem>>) attributes {dimension_semantics = [#tpu.dimension_semantics<parallel>, #tpu.dimension_semantics<arbitrary>], iteration_bounds = array<i64: 2, 4>, scalar_prefetch = 0 : i64, scratch_operands = 1 : i64, tpu.core_type = #tpu.core_type<tc>, window_params = [{transform_indices = @transform_0, window_bounds = array<i64: 8, 8, 32>}, {transform_indices = @transform_1, window_bounds = array<i64: 8, 128>}, {pipeline_mode = #tpu.pipeline_mode<synchronous>, transform_indices = @transform_2, window_bounds = array<i64: 128, 64>}, {pipeline_mode = #tpu.pipeline_mode<synchronous>, transform_indices = @transform_3, window_bounds = array<i64: 1, 64>}, {pipeline_mode = #tpu.pipeline_mode<synchronous>, transform_indices = @transform_4, window_bounds = array<i64: 64, 32>}, {pipeline_mode = #tpu.pipeline_mode<synchronous>, transform_indices = @transform_5, window_bounds = array<i64: 1, 32>}, {pipeline_mode = #tpu.pipeline_mode<synchronous>, transform_indices = @transform_6, window_bounds = array<i64: 32, 256>}, {pipeline_mode = #tpu.pipeline_mode<synchronous>, transform_indices = @transform_7, window_bounds = array<i64: 32, 256>}, {pipeline_mode = #tpu.pipeline_mode<synchronous>, transform_indices = @transform_8, window_bounds = array<i64: 1, 256>}, {pipeline_mode = #tpu.pipeline_mode<synchronous>, transform_indices = @transform_9, window_bounds = array<i64: 256, 128>}, {pipeline_mode = #tpu.pipeline_mode<synchronous>, transform_indices = @transform_10, window_bounds = array<i64: 1, 128>}, {pipeline_mode = #tpu.pipeline_mode<synchronous>, transform_indices = @transform_11, window_bounds = array<i64: 128, 128>}, {pipeline_mode = #tpu.pipeline_mode<synchronous>, transform_indices = @transform_12, window_bounds = array<i64: 1, 128>}, {transform_indices = @transform_13, window_bounds = array<i64: 8, 128>}]} {
    %c0_i32 = arith.constant 0 : i32
    %0 = arith.cmpi eq, %arg1, %c0_i32 : i32
    %1 = arith.extui %0 : i1 to i32
    %c0_i32_0 = arith.constant 0 : i32
    %2 = arith.cmpi ne, %1, %c0_i32_0 : i32
    scf.if %2 {
      %cst_10 = arith.constant 0.000000e+00 : f32
      %22 = vector.broadcast %cst_10 : f32 to vector<8x32xf32>
      %c0_11 = arith.constant 0 : index
      %c0_12 = arith.constant 0 : index
      %23 = vector.load %arg16[%c0_11, %c0_12] : memref<8x32xf32, #tpu.memory_space<vmem>>, vector<8x32xf32>
      tpu.vector_store %arg16[%c0_11, %c0_12], %22 {strides = array<i32>} : memref<8x32xf32, #tpu.memory_space<vmem>>, vector<8x32xf32>,
    } else {
    }
    %c8_i32 = arith.constant 8 : i32
    %3 = arith.muli %arg1, %c8_i32 : i32
    %c0 = arith.constant 0 : index
    %c0_1 = arith.constant 0 : index
    %c0_2 = arith.constant 0 : index
    %4 = vector.load %arg2[%c0, %c0_1, %c0_2] : memref<8x8x32xf32, #tpu.memory_space<vmem>>, vector<8x8x32xf32>
    %c0_i32_3 = arith.constant 0 : i32
    %5 = arith.addi %3, %c0_i32_3 : i32
    %6 = tpu.iota {dimensions = array<i32: 1>} : vector<1x8x1xi32>
    %7 = vector.broadcast %5 : i32 to vector<1x8x1xi32>
    %8 = arith.addi %7, %6 : vector<1x8x1xi32>
    %c28_i32 = arith.constant 28 : i32
    %9 = vector.broadcast %c28_i32 : i32 to vector<1x8x1xi32>
    %10 = arith.cmpi slt, %8, %9 : vector<1x8x1xi32>
    %cst = arith.constant 0.000000e+00 : f32
    %11 = vector.shape_cast %10 : vector<1x8x1xi1> to vector<1x8x1xi1>
    %12 = vector.broadcast %11 : vector<1x8x1xi1> to vector<8x8x32xi1>
    %13 = vector.broadcast %cst : f32 to vector<8x8x32xf32>
    %14 = arith.select %12, %4, %13 : vector<8x8x32xi1>, vector<8x8x32xf32>
    %cst_4 = arith.constant dense<0.000000e+00> : vector<8x32xf32>
    %15 = vector.multi_reduction <add>, %14, %cst_4 [1] : vector<8x8x32xf32> to vector<8x32xf32>
    %c0_5 = arith.constant 0 : index
    %c0_6 = arith.constant 0 : index
    %16 = vector.load %arg16[%c0_5, %c0_6] : memref<8x32xf32, #tpu.memory_space<vmem>>, vector<8x32xf32>
    %17 = arith.addf %16, %15 : vector<8x32xf32>
    %c0_7 = arith.constant 0 : index
    %c0_8 = arith.constant 0 : index
    %18 = vector.load %arg16[%c0_7, %c0_8] : memref<8x32xf32, #tpu.memory_space<vmem>>, vector<8x32xf32>
    tpu.vector_store %arg16[%c0_7, %c0_8], %17 {strides = array<i32>} : memref<8x32xf32, #tpu.memory_space<vmem>>, vector<8x32xf32>,
    %c3_i32 = arith.constant 3 : i32
    %19 = arith.cmpi eq, %arg1, %c3_i32 : i32
    %20 = arith.extui %19 : i1 to i32
    %c0_i32_9 = arith.constant 0 : i32
    %21 = arith.cmpi ne, %20, %c0_i32_9 : i32
    scf.if %21 {
      %c0_10 = arith.constant 0 : index
      %c0_11 = arith.constant 0 : index
      %22 = vector.load %arg16[%c0_10, %c0_11] : memref<8x32xf32, #tpu.memory_space<vmem>>, vector<8x32xf32>
      %cst_12 = arith.constant 0.0357142873 : f32
      %23 = vector.broadcast %cst_12 : f32 to vector<8x32xf32>
      %24 = arith.mulf %22, %23 : vector<8x32xf32>
      %c0_13 = arith.constant 0 : index
      %c0_14 = arith.constant 0 : index
      %25 = vector.load %arg3[%c0_13, %c0_14] : memref<8x128xf32, #tpu.memory_space<vmem>>, vector<8x128xf32>
      %c0_15 = arith.constant 0 : index
      %c0_16 = arith.constant 0 : index
      %26 = vector.load %arg4[%c0_15, %c0_16] : memref<128x64xf32, #tpu.memory_space<vmem>>, vector<128x64xf32>
      %cst_17 = arith.constant dense<0.000000e+00> : vector<8x64xf32>
      %27 = tpu.matmul %25, %26, %cst_17 {dimension_numbers = #tpu.dot_dimension_numbers<[1], [0], [0], [1], [0, 0, 1, 1], [], []>} : vector<8x128xf32>, vector<128x64xf32>, vector<8x64xf32> -> vector<8x64xf32>
      %c0_18 = arith.constant 0 : index
      %c0_19 = arith.constant 0 : index
      %28 = vector.load %arg5[%c0_18, %c0_19] : memref<1x64xf32, #tpu.memory_space<vmem>>, vector<1x64xf32>
      %29 = vector.broadcast %28 : vector<1x64xf32> to vector<8x64xf32>
      %30 = arith.addf %27, %29 : vector<8x64xf32>
      %cst_20 = arith.constant 0.000000e+00 : f32
      %31 = vector.broadcast %cst_20 : f32 to vector<8x64xf32>
      %32 = arith.maximumf %30, %31 : vector<8x64xf32>
      %c0_21 = arith.constant 0 : index
      %c0_22 = arith.constant 0 : index
      %33 = vector.load %arg6[%c0_21, %c0_22] : memref<64x32xf32, #tpu.memory_space<vmem>>, vector<64x32xf32>
      %cst_23 = arith.constant dense<0.000000e+00> : vector<8x32xf32>
      %34 = tpu.matmul %32, %33, %cst_23 {dimension_numbers = #tpu.dot_dimension_numbers<[1], [0], [0], [1], [0, 0, 1, 1], [], []>} : vector<8x64xf32>, vector<64x32xf32>, vector<8x32xf32> -> vector<8x32xf32>
      %c0_24 = arith.constant 0 : index
      %c0_25 = arith.constant 0 : index
      %35 = vector.load %arg7[%c0_24, %c0_25] : memref<1x32xf32, #tpu.memory_space<vmem>>, vector<1x32xf32>
      %36 = vector.broadcast %35 : vector<1x32xf32> to vector<8x32xf32>
      %37 = arith.addf %34, %36 : vector<8x32xf32>
      %c0_26 = arith.constant 0 : index
      %c0_27 = arith.constant 0 : index
      %38 = vector.load %arg8[%c0_26, %c0_27] : memref<32x256xf32, #tpu.memory_space<vmem>>, vector<32x256xf32>
      %cst_28 = arith.constant dense<0.000000e+00> : vector<8x256xf32>
      %39 = tpu.matmul %24, %38, %cst_28 {dimension_numbers = #tpu.dot_dimension_numbers<[1], [0], [0], [1], [0, 0, 1, 1], [], []>} : vector<8x32xf32>, vector<32x256xf32>, vector<8x256xf32> -> vector<8x256xf32>
      %c0_29 = arith.constant 0 : index
      %c0_30 = arith.constant 0 : index
      %40 = vector.load %arg9[%c0_29, %c0_30] : memref<32x256xf32, #tpu.memory_space<vmem>>, vector<32x256xf32>
      %cst_31 = arith.constant dense<0.000000e+00> : vector<8x256xf32>
      %41 = tpu.matmul %37, %40, %cst_31 {dimension_numbers = #tpu.dot_dimension_numbers<[1], [0], [0], [1], [0, 0, 1, 1], [], []>} : vector<8x32xf32>, vector<32x256xf32>, vector<8x256xf32> -> vector<8x256xf32>
      %42 = arith.addf %39, %41 : vector<8x256xf32>
      %c0_32 = arith.constant 0 : index
      %c0_33 = arith.constant 0 : index
      %43 = vector.load %arg10[%c0_32, %c0_33] : memref<1x256xf32, #tpu.memory_space<vmem>>, vector<1x256xf32>
      %44 = vector.broadcast %43 : vector<1x256xf32> to vector<8x256xf32>
      %45 = arith.addf %42, %44 : vector<8x256xf32>
      %cst_34 = arith.constant 0.000000e+00 : f32
      %46 = vector.broadcast %cst_34 : f32 to vector<8x256xf32>
      %47 = arith.maximumf %45, %46 : vector<8x256xf32>
      %c0_35 = arith.constant 0 : index
      %c0_36 = arith.constant 0 : index
      %48 = vector.load %arg11[%c0_35, %c0_36] : memref<256x128xf32, #tpu.memory_space<vmem>>, vector<256x128xf32>
      %cst_37 = arith.constant dense<0.000000e+00> : vector<8x128xf32>
      %49 = tpu.matmul %47, %48, %cst_37 {dimension_numbers = #tpu.dot_dimension_numbers<[1], [0], [0], [1], [0, 0, 1, 1], [], []>} : vector<8x256xf32>, vector<256x128xf32>, vector<8x128xf32> -> vector<8x128xf32>
      %c0_38 = arith.constant 0 : index
      %c0_39 = arith.constant 0 : index
      %50 = vector.load %arg12[%c0_38, %c0_39] : memref<1x128xf32, #tpu.memory_space<vmem>>, vector<1x128xf32>
      %51 = vector.broadcast %50 : vector<1x128xf32> to vector<8x128xf32>
      %52 = arith.addf %49, %51 : vector<8x128xf32>
      %cst_40 = arith.constant 0.000000e+00 : f32
      %53 = vector.broadcast %cst_40 : f32 to vector<8x128xf32>
      %54 = arith.maximumf %52, %53 : vector<8x128xf32>
      %c0_41 = arith.constant 0 : index
      %c0_42 = arith.constant 0 : index
      %55 = vector.load %arg13[%c0_41, %c0_42] : memref<128x128xf32, #tpu.memory_space<vmem>>, vector<128x128xf32>
      %cst_43 = arith.constant dense<0.000000e+00> : vector<8x128xf32>
      %56 = tpu.matmul %54, %55, %cst_43 {dimension_numbers = #tpu.dot_dimension_numbers<[1], [0], [0], [1], [0, 0, 1, 1], [], []>} : vector<8x128xf32>, vector<128x128xf32>, vector<8x128xf32> -> vector<8x128xf32>
      %c0_44 = arith.constant 0 : index
      %c0_45 = arith.constant 0 : index
      %57 = vector.load %arg14[%c0_44, %c0_45] : memref<1x128xf32, #tpu.memory_space<vmem>>, vector<1x128xf32>
      %58 = vector.broadcast %57 : vector<1x128xf32> to vector<8x128xf32>
      %59 = arith.addf %56, %58 : vector<8x128xf32>
      %c0_46 = arith.constant 0 : index
      %c0_47 = arith.constant 0 : index
      %60 = vector.load %arg15[%c0_46, %c0_47] : memref<8x128xf32, #tpu.memory_space<vmem>>, vector<8x128xf32>
      tpu.vector_store %arg15[%c0_46, %c0_47], %59 {strides = array<i32>} : memref<8x128xf32, #tpu.memory_space<vmem>>, vector<8x128xf32>,
    } else {
    }
    return
  }
  func.func @transform_0(%arg0: i32, %arg1: i32) -> (i32, i32, i32) {
    %c0_i32 = arith.constant 0 : i32
    %c0_i32_0 = arith.constant 0 : i32
    return %arg0, %arg1, %c0_i32 : i32, i32, i32
  }
  func.func @transform_1(%arg0: i32, %arg1: i32) -> (i32, i32) {
    %c0_i32 = arith.constant 0 : i32
    %c0_i32_0 = arith.constant 0 : i32
    return %arg0, %c0_i32 : i32, i32
  }
  func.func @transform_2(%arg0: i32, %arg1: i32) -> (i32, i32) {
    %c0_i32 = arith.constant 0 : i32
    %c0_i32_0 = arith.constant 0 : i32
    %c0_i32_1 = arith.constant 0 : i32
    return %c0_i32, %c0_i32_0 : i32, i32
  }
  func.func @transform_3(%arg0: i32, %arg1: i32) -> (i32, i32) {
    %c0_i32 = arith.constant 0 : i32
    %c0_i32_0 = arith.constant 0 : i32
    %c0_i32_1 = arith.constant 0 : i32
    return %c0_i32, %c0_i32_0 : i32, i32
  }
  func.func @transform_4(%arg0: i32, %arg1: i32) -> (i32, i32) {
    %c0_i32 = arith.constant 0 : i32
    %c0_i32_0 = arith.constant 0 : i32
    %c0_i32_1 = arith.constant 0 : i32
    return %c0_i32, %c0_i32_0 : i32, i32
  }
  func.func @transform_5(%arg0: i32, %arg1: i32) -> (i32, i32) {
    %c0_i32 = arith.constant 0 : i32
    %c0_i32_0 = arith.constant 0 : i32
    %c0_i32_1 = arith.constant 0 : i32
    return %c0_i32, %c0_i32_0 : i32, i32
  }
  func.func @transform_6(%arg0: i32, %arg1: i32) -> (i32, i32) {
    %c0_i32 = arith.constant 0 : i32
    %c0_i32_0 = arith.constant 0 : i32
    %c0_i32_1 = arith.constant 0 : i32
    return %c0_i32, %c0_i32_0 : i32, i32
  }
  func.func @transform_7(%arg0: i32, %arg1: i32) -> (i32, i32) {
    %c0_i32 = arith.constant 0 : i32
    %c0_i32_0 = arith.constant 0 : i32
    %c0_i32_1 = arith.constant 0 : i32
    return %c0_i32, %c0_i32_0 : i32, i32
  }
  func.func @transform_8(%arg0: i32, %arg1: i32) -> (i32, i32) {
    %c0_i32 = arith.constant 0 : i32
    %c0_i32_0 = arith.constant 0 : i32
    %c0_i32_1 = arith.constant 0 : i32
    return %c0_i32, %c0_i32_0 : i32, i32
  }
  func.func @transform_9(%arg0: i32, %arg1: i32) -> (i32, i32) {
    %c0_i32 = arith.constant 0 : i32
    %c0_i32_0 = arith.constant 0 : i32
    %c0_i32_1 = arith.constant 0 : i32
    return %c0_i32, %c0_i32_0 : i32, i32
  }
  func.func @transform_10(%arg0: i32, %arg1: i32) -> (i32, i32) {
    %c0_i32 = arith.constant 0 : i32
    %c0_i32_0 = arith.constant 0 : i32
    %c0_i32_1 = arith.constant 0 : i32
    return %c0_i32, %c0_i32_0 : i32, i32
  }
  func.func @transform_11(%arg0: i32, %arg1: i32) -> (i32, i32) {
    %c0_i32 = arith.constant 0 : i32
    %c0_i32_0 = arith.constant 0 : i32
    %c0_i32_1 = arith.constant 0 : i32
    return %c0_i32, %c0_i32_0 : i32, i32
  }
  func.func @transform_12(%arg0: i32, %arg1: i32) -> (i32, i32) {
    %c0_i32 = arith.constant 0 : i32
    %c0_i32_0 = arith.constant 0 : i32
    %c0_i32_1 = arith.constant 0 : i32
    return %c0_i32, %c0_i32_0 : i32, i32
  }
  func.func @transform_13(%arg0: i32, %arg1: i32) -> (i32, i32) {
    %c0_i32 = arith.constant 0 : i32
    %c0_i32_0 = arith.constant 0 : i32
    return %arg0, %c0_i32 : i32, i32
  }
}

</mosaic_0001>

<bundles_post_ra>
// kernel: tpu_custom_call.1
= control target key start
LH: loop header
LB: loop body
LE: loop exit
PB: predicated region body
PF: predicated region fallthrough
CT: control target
= control target key end

     0   :  { %s2938_s0 = inlined_call_operand.hbm [shape: f32[10,28,32], index: 0, kind: input, shape index: {}]   ;;  %s2939_s1 = inlined_call_operand.hbm [shape: f32[16,128], index: 1, kind: input, shape index: {}]   ;;  %s2940_s2 = inlined_call_operand.vmem [shape: f32[128,64], index: 2, kind: input, shape index: {}]   ;;  %s2941_s3 = inlined_call_operand.hbm [shape: f32[1,64], index: 3, kind: input, shape index: {}]   ;;  %s2942_s4 = inlined_call_operand.vmem [shape: f32[64,32], index: 4, kind: input, shape index: {}]   ;;  %s2943_s5 = inlined_call_operand.hbm [shape: f32[1,32], index: 5, kind: input, shape index: {}]   ;;  %s2944_s6 = inlined_call_operand.vmem [shape: f32[32,256], index: 6, kind: input, shape index: {}]   ;;  %s2945_s7 = inlined_call_operand.hbm [shape: f32[32,256], index: 7, kind: input, shape index: {}]   ;;  %s2946_s8 = inlined_call_operand.vmem [shape: f32[1,256], index: 8, kind: input, shape index: {}]   ;;  %s2947_s9 = inlined_call_operand.vmem [shape: f32[256,128], index: 9, kind: input, shape index: {}]   ;;  %s2948_s10 = inlined_call_operand.vmem [shape: f32[1,128], index: 10, kind: input, shape index: {}]   ;;  %s2949_s11 = inlined_call_operand.hbm [shape: f32[128,128], index: 11, kind: input, shape index: {}]   ;;  %s2950_s12 = inlined_call_operand.vmem [shape: f32[1,128], index: 12, kind: input, shape index: {}]   ;;  %s2951_s13 = inlined_call_operand.hbm [shape: f32[16,128], index: 13, kind: output, shape index: {}]  }
   0x1   :  { %2976 = sst [smem:[#allocation33_spill]] %s2938_s0 }
   0x2   :  { %2977 = sst [smem:[#allocation34_spill]] %s2940_s2 }
   0x3   :  { %2978 = sst [smem:[#allocation35_spill]] %s2941_s3 }
   0x4   :  { %2979 = sst [smem:[#allocation36_spill]] %s2942_s4 }
   0x5   :  { %2980 = sst [smem:[#allocation37_spill]] %s2944_s6 }
   0x6   :  { %2981 = sst [smem:[#allocation38_spill]] %s2946_s8 }
   0x7   :  { %2982 = sst [smem:[#allocation39_spill]] %s2947_s9 }
   0x8   :  { %2983 = sst [smem:[#allocation40_spill]] %s2948_s10 }
   0x9   :  { %2984 = sst [smem:[#allocation41_spill]] %s2950_s12 }
   0xa   :  { %2985 = sst [smem:[#allocation42_spill]] %s2951_s13 }
   0xb   :  { %18 = vsyncpa [#allocation4], 0 }
   0xc   :  { %20 = vsyncpa [#allocation4 + $0x1], 0 }
   0xd   :  { %21 = vsyncpa [#allocation7], 0 }
   0xe   :  { %23 = vsyncpa [#allocation7 + $0x1], 0 }
   0xf   :  { %24 = vsyncpa [#allocation10], 0 }
  0x10   :  { %25 = vsyncpa [#allocation13], 0 }
  0x11   :  { %26 = vsyncpa [#allocation5], 0 }
  0x12   :  { %28 = vsyncpa [#allocation5 + $0x1], 0  ;;  %s2286_s25 = smov 0   ;;  %s2288_s26 = smov 0  }
  0x13   :  { %s2290_s27 = smov 0   ;;  %s2292_s28 = smov 0  }
  0x14   :  { %s2294_s29 = smov 0   ;;  %s2296_s30 = smov 0  }
  0x15   :  { %s2298_s14 = smov 0   ;;  %s2300_s15 = smov 0  }
  0x16   :  { %s2302_s16 = smov 0   ;;  %s2304_s17 = smov 0  }
  0x17   :  { %s2306_s18 = smov 0  }
  0x18 LB: > { %2986 = sst [smem:[#allocation21_spill]] %s2156_s25  ;;  %s2340_s19 = sadd.s32 4294967295, %s2196_s18   ;;  %s2196_s18 = sphi %s2306_s18, %s34_s18   ;;  %s2192_s17 = sphi %s2304_s17, %s3056_s17   ;;  %s2188_s16 = sphi %s2302_s16, %s3055_s16   ;;  %s2184_s15 = sphi %s2300_s15, %s3054_s15   ;;  %s2180_s14 = sphi %s2298_s14, %s3053_s14   ;;  %s2176_s30 = sphi %s2296_s30, %s3052_s30   ;;  %s2172_s29 = sphi %s2294_s29, %s3051_s29   ;;  %s2168_s28 = sphi %s2292_s28, %s3050_s28   ;;  %s2164_s27 = sphi %s2290_s27, %s3049_s27   ;;  %s2160_s26 = sphi %s2288_s26, %s3048_s26   ;;  %s2156_s25 = sphi %s2286_s25, %s3043_s25  }
  0x19   : > { %2987 = sst [smem:[#allocation22_spill]] %s2160_s26  ;;  %s1423_s20 = sadd.s32 4294967294, %s2196_s18  }
  0x1a   : > { %2988 = sst [smem:[#allocation23_spill]] %s2180_s14  ;;  %s43_s21 = sadd.s32 1, %s2188_s16 }
  0x1b   : > { %2989 = sst [smem:[#allocation24_spill]] %s2184_s15  ;;  %s46_s22 = sadd.s32 1, %s2192_s17 }
  0x1c   : > { %2990 = sst [smem:[#allocation25_spill]] %s2340_s19  ;;  %p44_p0 = scmp.ge.s32.totalorder %s43_s21, 4 }
  0x1d   : > { %s55_s23 = sadd.s32 1, %s2176_s30  ;;  %p62_p1 = scmp.ne.s32.totalorder %s2176_s30, %s2172_s29 }
  0x1e   : > { %p63_p2 = scmp.eq.s32.totalorder %s2196_s18, 0  ;;  %s3058_s21 = smov (%p44_p0, %s43_s21), 0 }
  0x1f   : > { %2991 = sst [smem:[#allocation26_spill]] %s3058_s21  ;;  %s3060_s22 = smov (!%p44_p0, %s46_s22), %s2192_s17 }
  0x20   : > { %s51_s24 = ssub.s32 %s2188_s16, %s3058_s21  ;;  %p2356_p3 = por %p63_p2, %p62_p1 }
  0x21   : > { %p48_p4 = scmp.ge.s32.totalorder %s3060_s22, 2  ;;  %p68_p5 = scmp.ne.s32.totalorder %s2172_s29, %s2168_s28 }
  0x22   : > { %s2992_s13 = scalar_select %p2356_p3, 1, 0 }
  0x23   : > { %p2956_p6 = scmp.eq.s32.totalorder %s2340_s19, 0  ;;  %s81_s15 = sadd.s32 1, %s2164_s27 }
  0x24   : > { %s3062_s22 = smov (%p48_p4, %s3060_s22), 0  ;;  %p88_p8 = scmp.ne.s32.totalorder %s2164_s27, %s2160_s26 }
  0x25   : > { %2993 = sst [smem:[#allocation27_spill]] %s3062_s22  ;;  %p2367_p7 = por %p2956_p6, %p68_p5 }
  0x26   : > { %s50_s12 = ssub.s32 %s2192_s17, %s3062_s22  ;;  %p94_p9 = scmp.ne.s32.totalorder %s2160_s26, %s2156_s25 }
  0x27   : > { %s2994_s21 = scalar_select %p2367_p7, 1, 0 }
  0x28   : > { %s52_s28 = sor.u32 %s51_s24, %s50_s12  ;;  %p79_p10 = scmp.eq.s32.totalorder %s50_s12, 0 }
  0x29   : > { %p53_p11 = scmp.eq.s32.totalorder %s52_s28, 0  ;;  %p2382_p12 = por %p88_p8, %p63_p2 }
  0x2a   : > { %s2387_s8 = scalar_select %p79_p10, %s2164_s27, %s81_s15  }
  0x2b   : > { %s2995_s10 = scalar_select %p2382_p12, 1, 0 }
  0x2c   : > { %2996 = sst [smem:[#allocation28_spill]] %s2387_s8  ;;  %p2397_p13 = por %p94_p9, %p2956_p6 }
  0x2d   : > { %s2390_s9 = scalar_select %p53_p11, %s2176_s30, %s55_s23  }
  0x2e   : > { %s2998_s6 = scalar_select %p2397_p13, 1, 0 }
  0x2f   : > { %2997 = sst [smem:[#allocation29_spill]] %s2390_s9  ;;  %p349_p0 = scmp.eq.s32.totalorder %s2340_s19, 7 }
  0x30   : > { %2999 = sst [smem:[#allocation30_spill]] %s2998_s6  ;;  %p355_p1 = scmp.eq.s32.totalorder %s1423_s20, 7 }
  0x31   : > { %p1424_p4 = scmp.ge.s32.totalorder %s2196_s18, 1  ;;  %p2406_p5 = por %p349_p0, %p88_p8 }
  0x32   : > { %p362_p2 = scmp.lt.s32.totalorder %s2196_s18, 9  ;;  %p2414_p10 = por %p355_p1, %p94_p9 }
  0x33   : > { %s3000_s12 = scalar_select %p2406_p5, 1, 0 }
  0x34   : > { %s3002_s15 = scalar_select %p2414_p10, 1, 0 }
  0x35   : > { %3001 = sst [smem:[#allocation31_spill]] %s3000_s12  ;;  %p2418_p11 = pnand %p1424_p4, %p362_p2 }
  0x36   : > { %3003 = sst [smem:[#allocation32_spill]] %s3002_s15  ;;  %s2198_s24 = smov [#allocation9]  }
  0x37   : > { %s3004_s23 = scalar_select %p2418_p11, 1, 0 }
  0x38   : > { %s392_s28 = sshll.u32 %s2198_s24, 4  ;;  %p1761_p6 = pneg %p2418_p11  ;;  %s393_s28 = int_to_ptr.vmem [resolvable:$true] %s392_s28 }
  0x39   : > { %p3005_p8 = scmp.eq.s32.totalorder %s2340_s19, 0  ;;  %s2199_s22 = smov [#allocation8]  }
  0x3a   : > { %s378_s9 = sshll.u32 %s2199_s22, 4  ;;  %s1890_s25 = scalar_lea.hbm %s2943_s5, 16  ;;  %s379_s9 = int_to_ptr.vmem [resolvable:$true] %s378_s9 }
  0x3b   : > { %p2426_p0 = pnand %p1761_p6, %p3005_p8  ;;  %p1891_p9 = scmp.ne.s32.totalorder %s2943_s5, %s1890_s25 }
  0x3c   : > { %p1897_p2 = scmp.lt.u32.totalorder %s1890_s25, %s2943_s5 }
  0x3d   : > { %p2438_p1 = pneg %p2426_p0 }
  0x3f   : > { %p1893_p6 = pnand %p2438_p1, %p1891_p9 }
  0x41   : > { %p1894_p4 = pneg %p1893_p6 }
  0x43   : > { %p1899_p8 = pnand %p1897_p2, %p1894_p4 }
  0x45   : > { %1902 = shalt.err (!%p1899_p8)
}
  0x46   : > { %s1903_s8 = scalar_lea.vmem %s393_s28, 16  ;;  %s1910_s4 = scalar_lea.vmem %s393_s28, 32 }
  0x47   : > { %p1904_p10 = scmp.ne.s32.totalorder %s393_s28, %s1903_s8  ;;  %p1911_p7 = scmp.lt.s32.totalorder %s393_s28, %s393_s28 }
  0x48   : > { %p1912_p11 = scmp.lt.s32.totalorder %s1910_s4, %s1903_s8 }
  0x49   : > { %p1906_p5 = pnand %p1904_p10, %p2438_p1 }
  0x4a   : > { %p1913_p12 = por %p1912_p11, %p1911_p7 }
  0x4b   : > { %p1907_p13 = pneg %p1906_p5 }
  0x4d   : > { %p1914_p3 = pnand %p1913_p12, %p1907_p13 }
  0x4f   : > { %1917 = shalt.err (!%p1914_p3)
}
  0x50   : > { %1767 = dma.hbm_to_vmem [thread:$0]  (!%p2426_p0), %s2943_s5, 16, %s393_s28, [#allocation10]  }
  0x51   : > { %s2200_s2 = smov [#allocation11]   ;;  %s3008_s3 = sld [smem:[#allocation35_spill]] }
  0x52   : > { %s405_s25 = sshll.u32 %s2200_s2, 4  ;;  %s406_s25 = int_to_ptr.vmem [resolvable:$true] %s405_s25 }
  0x57   : > { %s1918_s6 = scalar_lea.hbm %s3008_s3, 16 }
  0x58   : > { %p1919_p7 = scmp.ne.s32.totalorder %s3008_s3, %s1918_s6  ;;  %p1925_p13 = scmp.lt.u32.totalorder %s1918_s6, %s3008_s3 }
  0x5a   : > { %p1921_p3 = pnand %p1919_p7, %p2438_p1 }
  0x5c   : > { %p1922_p12 = pneg %p1921_p3 }
  0x5e   : > { %p1927_p5 = pnand %p1925_p13, %p1922_p12 }
  0x60   : > { %1930 = shalt.err (!%p1927_p5)
}
  0x61   : > { %s1931_s28 = scalar_lea.vmem %s379_s9, 16  ;;  %s1938_s22 = scalar_lea.vmem %s379_s9, 32 }
  0x62   : > { %p1932_p10 = scmp.ne.s32.totalorder %s379_s9, %s1931_s28  ;;  %p1939_p6 = scmp.lt.s32.totalorder %s379_s9, %s379_s9 }
  0x63   : > { %p1940_p4 = scmp.lt.s32.totalorder %s1938_s22, %s1931_s28 }
  0x64   : > { %p1934_p11 = pnand %p1932_p10, %p2438_p1 }
  0x65   : > { %p1941_p2 = por %p1940_p4, %p1939_p6 }
  0x66   : > { %p1935_p9 = pneg %p1934_p11 }
  0x68   : > { %p1942_p8 = pnand %p1941_p2, %p1935_p9 }
  0x6a   : > { %1945 = shalt.err (!%p1942_p8)
}
  0x6b   : > { %1764 = dma.hbm_to_vmem [thread:$0]  (!%p2426_p0), %s3008_s3, 16, %s379_s9, [#allocation7]  }
  0x6c   : > { %s1946_s2 = scalar_lea.hbm %s2945_s7, 1024 }
  0x6d   : > { %p1947_p7 = scmp.ne.s32.totalorder %s2945_s7, %s1946_s2  ;;  %p1953_p13 = scmp.lt.u32.totalorder %s1946_s2, %s2945_s7 }
  0x6f   : > { %p1949_p3 = pnand %p1947_p7, %p2438_p1 }
  0x71   : > { %p1950_p12 = pneg %p1949_p3 }
  0x73   : > { %p1955_p5 = pnand %p1953_p13, %p1950_p12 }
  0x75   : > { %1958 = shalt.err (!%p1955_p5)
}
  0x76   : > { %s1959_s28 = scalar_lea.vmem %s406_s25, 1024  ;;  %p1967_p6 = scmp.lt.s32.totalorder %s406_s25, %s406_s25 }
  0x77   : > { %p1960_p10 = scmp.ne.s32.totalorder %s406_s25, %s1959_s28  ;;  %p1968_p4 = scmp.lt.s32.totalorder %s1959_s28, %s1959_s28 }
  0x79   : > { %p1962_p11 = pnand %p1960_p10, %p2438_p1  ;;  %p1969_p2 = por %p1968_p4, %p1967_p6 }
  0x7b   : > { %p1963_p9 = pneg %p1962_p11 }
  0x7d   : > { %p1970_p8 = pnand %p1969_p2, %p1963_p9 }
  0x7f   : > { %1973 = shalt.err (!%p1970_p8)
}
  0x80   : > { %s2201_s9 = smov 256   ;;  %s2202_s22 = smov 16  }
  0x81   : > { %1770 = dma.hbm_to_vmem [thread:$0]  (!%p2426_p0), %s2945_s7, 1024, %s406_s25, [#allocation10], %s2201_s9, %s2201_s9, %s2202_s22  }
  0x82   : > { %s2203_s6 = smov [#allocation12]   ;;  %s1974_s15 = scalar_lea.hbm %s2949_s11, 2048 }
  0x83   : > { %s427_s12 = sshll.u32 %s2203_s6, 4  ;;  %p1975_p7 = scmp.ne.s32.totalorder %s2949_s11, %s1974_s15  ;;  %s428_s12 = int_to_ptr.vmem [resolvable:$true] %s427_s12 }
  0x84   : > { %p1981_p13 = scmp.lt.u32.totalorder %s1974_s15, %s2949_s11 }
  0x85   : > { %p1977_p3 = pnand %p1975_p7, %p2438_p1 }
  0x87   : > { %p1978_p12 = pneg %p1977_p3 }
  0x89   : > { %p1983_p5 = pnand %p1981_p13, %p1978_p12 }
  0x8b   : > { %1986 = shalt.err (!%p1983_p5)
}
  0x8c   : > { %s1987_s25 = scalar_lea.vmem %s428_s12, 2048  ;;  %p1995_p6 = scmp.lt.s32.totalorder %s428_s12, %s428_s12 }
  0x8d   : > { %p1988_p10 = scmp.ne.s32.totalorder %s428_s12, %s1987_s25  ;;  %p1996_p4 = scmp.lt.s32.totalorder %s1987_s25, %s1987_s25 }
  0x8f   : > { %p1990_p11 = pnand %p1988_p10, %p2438_p1  ;;  %p1997_p2 = por %p1996_p4, %p1995_p6 }
  0x91   : > { %p1991_p9 = pneg %p1990_p11 }
  0x93   : > { %p1998_p8 = pnand %p1997_p2, %p1991_p9 }
  0x95   : > { %2001 = shalt.err (!%p1998_p8)
}
  0x96   : > { %s2204_s9 = smov 128   ;;  %s2205_s22 = smov 8  }
  0x97   : > { %1773 = dma.hbm_to_vmem [thread:$0]  (!%p2426_p0), %s2949_s11, 2048, %s428_s12, [#allocation13], %s2204_s9, %s2204_s9, %s2205_s22  }
  0x98   : > { %p1429_p7 = scmp.ge.s32.totalorder %s2196_s18, 8 }
  0x99   : > { %p3009_p3 = scmp.ne.s32.totalorder (!%p1429_p7), %s2992_s13, 0 }
  0x9a   : > { %440 = sbr.rel (%p1429_p7) target bundleno = 229 (0xe5), region = 60 }
  0xa1   : > { %443 = sbr.rel (!%p3009_p3) target bundleno = 203 (0xcb), region = 64  ;;  %s444_s24 = sand.u32 (%p3009_p3), 1, %s2176_s30  }
  0xa2   : > { %s1431_s19 = sshll.u32 (%p3009_p3), %s2192_s17, 3  ;;  %s1430_s6 = sshll.u32 (%p3009_p3), %s444_s24, 6 }
  0xa3   : > { %s450_s2 = ssub.s32 (%p3009_p3), 10, %s1431_s19  ;;  %s2516_s15 = scalar_lea.sflag (%p3009_p3), [#allocation4], %s444_s24 }
  0xa4   : > { %p451_p1 = scmp.lt.s32.totalorder (%p3009_p3), %s450_s2, 8  ;;  %s448_s12 = scalar_lea.vmem (%p3009_p3), [#allocation3], %s1430_s6 }
  0xa8   : > { %s3064_s2 = smov (!%p451_p1, %s450_s2), 8 }
  0xa9   : > { %s2513_s14 = sshll.u32 %s3064_s2, 7 }
  0xaa   : > { %s455_s20 = ssub.s32 1024, %s2513_s14 }
  0xab   : > { %456 = vsyncadd %s2516_s15, %s455_s20  ;;  %p1433_p0 = scmp.ne.s32.totalorder %s2513_s14, 0  ;;  %s1462_s13 = sshll.u32 %s2192_s17, 5 }
  0xac   : > { %s459_s8 = sadd.s32 %s2188_s16, %s1462_s13  ;;  %s463_s4 = sshll.u32 %s448_s12, 4  ;;  %s2522_s4 = int_to_ptr.vmem [resolvable:$true] %s463_s4 }
  0xad   : > { %s1435_s28 = sshll.u32 %s459_s8, 7  ;;  %s3010_s0 = sld [smem:[#allocation33_spill]] }
  0xb3   : > { %s2527_s22 = scalar_lea.hbm %s3010_s0, %s1435_s28  ;;  %s2006_s19 = scalar_lea.hbm %s3010_s0, 5120 }
  0xb4   : > { %s2002_s26 = scalar_lea.hbm %s2527_s22, %s2513_s14  ;;  %p2007_p10 = scmp.lt.u32.totalorder %s2527_s22, %s3010_s0 }
  0xb5   : > { %p2003_p12 = scmp.ne.s32.totalorder %s2527_s22, %s2002_s26  ;;  %p2008_p11 = scmp.lt.u32.totalorder %s2006_s19, %s2002_s26 }
  0xb6   : > { %p2010_p6 = scmp.lt.u32.totalorder %s2002_s26, %s2527_s22 }
  0xb7   : > { %p2004_p13 = pnand %p2003_p12, %p1433_p0  ;;  %p2009_p9 = por %p2008_p11, %p2007_p10 }
  0xb9   : > { %p2005_p5 = pneg %p2004_p13  ;;  %p2011_p4 = por %p2010_p6, %p2009_p9 }
  0xbb   : > { %p2012_p2 = pnand %p2011_p4, %p2005_p5 }
  0xbd   : > { %2015 = shalt.err (!%p2012_p2)
}
  0xbe   : > { %s2016_s20 = scalar_lea.vmem %s2522_s4, %s2513_s14  ;;  %s2206_s12 = smov [#allocation3]  }
  0xbf   : > { %p2017_p8 = scmp.ne.s32.totalorder %s2522_s4, %s2016_s20  ;;  %s2020_s13 = sshll.u32 %s2206_s12, 4  ;;  %s2021_s13 = int_to_ptr.vmem [resolvable:$false] %s2020_s13 }
  0xc0   : > { %s2022_s8 = scalar_lea.vmem %s2021_s13, 2048  ;;  %p2023_p1 = scmp.lt.s32.totalorder %s2522_s4, %s2021_s13 }
  0xc1   : > { %p2018_p7 = pnand %p2017_p8, %p1433_p0  ;;  %p2024_p12 = scmp.lt.s32.totalorder %s2022_s8, %s2016_s20 }
  0xc3   : > { %p2019_p3 = pneg %p2018_p7  ;;  %p2025_p13 = por %p2024_p12, %p2023_p1 }
  0xc5   : > { %p2026_p10 = pnand %p2025_p13, %p2019_p3 }
  0xc7   : > { %2029 = shalt.err (!%p2026_p10)
}
  0xc8   : > { %s2207_s28 = smov 512   ;;  %s2208_s25 = smov 128  }
  0xc9   : > { %s2209_s9 = smov 8  }
  0xca   : > { %469 = dma.hbm_to_vmem [thread:$0]  (%p1433_p0), %s2527_s22, %s2513_s14, %s2522_s4, %s2516_s15, %s2207_s28, %s2208_s25, %s2209_s9  }
  0xcb PF: > { %s473_s26 = sand.u32 1, %s2196_s18   ;;  %s475_s3 = sand.u32 1, %s2164_s27  }
  0xcc   : > { %s1438_s24 = sshll.u32 %s475_s3, 3  ;;  %s1439_s19 = sshll.u32 %s2192_s17, 7 }
  0xcd   : > { %s2560_s20 = scalar_lea.hbm %s2939_s1, %s1439_s19  ;;  %s477_s12 = scalar_lea.vmem [#allocation6], %s1438_s24 }
  0xce   : > { %s484_s14 = sshll.u32 %s477_s12, 4  ;;  %s474_s15 = scalar_lea.sflag [#allocation7], %s473_s26  ;;  %s485_s14 = int_to_ptr.vmem [resolvable:$true] %s484_s14 }
  0xcf   : > { %s2030_s4 = scalar_lea.hbm %s2560_s20, 128  ;;  %p3011_p5 = scmp.ne.s32.totalorder %s2995_s10, 0 }
  0xd0   : > { %p2031_p0 = scmp.ne.s32.totalorder %s2560_s20, %s2030_s4  ;;  %s2034_s8 = scalar_lea.hbm %s2939_s1, 256 }
  0xd1   : > { %p2035_p6 = scmp.lt.u32.totalorder %s2560_s20, %s2939_s1  ;;  %p2036_p4 = scmp.lt.u32.totalorder %s2034_s8, %s2030_s4 }
  0xd2   : > { %p2032_p11 = pnand %p2031_p0, %p3011_p5  ;;  %p2038_p8 = scmp.lt.u32.totalorder %s2030_s4, %s2560_s20 }
  0xd3   : > { %p2037_p2 = por %p2036_p4, %p2035_p6 }
  0xd4   : > { %p2033_p9 = pneg %p2032_p11 }
  0xd5   : > { %p2039_p7 = por %p2038_p8, %p2037_p2 }
  0xd7   : > { %p2040_p3 = pnand %p2039_p7, %p2033_p9 }
  0xd9   : > { %2043 = shalt.err (!%p2040_p3)
}
  0xda   : > { %s2044_s9 = scalar_lea.vmem %s485_s14, 128  ;;  %s2210_s26 = smov [#allocation6]  }
  0xdb   : > { %p2045_p1 = scmp.ne.s32.totalorder %s485_s14, %s2044_s9  ;;  %s2048_s3 = sshll.u32 %s2210_s26, 4  ;;  %s2049_s3 = int_to_ptr.vmem [resolvable:$false] %s2048_s3 }
  0xdc   : > { %s2050_s24 = scalar_lea.vmem %s2049_s3, 256  ;;  %p2051_p10 = scmp.lt.s32.totalorder %s485_s14, %s2049_s3 }
  0xdd   : > { %p2046_p12 = pnand %p2045_p1, %p3011_p5  ;;  %p2052_p0 = scmp.lt.s32.totalorder %s2050_s24, %s2044_s9 }
  0xdf   : > { %p2047_p13 = pneg %p2046_p12  ;;  %p2053_p11 = por %p2052_p0, %p2051_p10 }
  0xe1   : > { %p2054_p4 = pnand %p2053_p11, %p2047_p13 }
  0xe3   : > { %2057 = shalt.err (!%p2054_p4)
}
  0xe4   : > { %1748 = dma.hbm_to_vmem [thread:$0]  (%p3011_p5), %s2560_s20, 128, %s485_s14, %s474_s15  }
  0xe5 PF: > { %p3012_p9 = scmp.ne.s32.totalorder %s3004_s23, 0 }
  0xe6   : > { %s495_s19 = sand.u32 (!%p3012_p9), 1, %s2172_s29   ;;  %p3013_p6 = scmp.ne.s32.totalorder (!%p3012_p9), %s2994_s21, 0 }
  0xe7   : > { %493 = sbr.rel (%p3012_p9) target bundleno = 1451 (0x5ab), region = 72  ;;  %s1441_s6 = sshll.u32 (!%p3012_p9), %s495_s19, 6 }
  0xe8   : > { %s496_s2 = scalar_lea.sflag (!%p3012_p9), [#allocation4], %s495_s19  ;;  %s2582_s12 = scalar_lea.vmem (!%p3012_p9), [#allocation3], %s1441_s6 }
  0xee   : > { %2131 = dma.done.wait (%p3013_p6), %s496_s2, 1024  }
  0xef   : > { %2133 = vsyncadd (%p3013_p6), %s496_s2, 4294966272  ;;  %s3014_s4 = sld [smem:[#allocation25_spill]]  ;;  %s3016_s20 = sld [smem:[#allocation30_spill]] }
  0xf0   : > { %s3015_s10 = sld [smem:[#allocation22_spill]] }
  0xf5   : > { %s504_s14 = sand.u32 1, %s3014_s4   ;;  %p3017_p5 = scmp.ne.s32.totalorder %s3016_s20, 0 }
  0xf6   : > { %s506_s15 = sand.u32 1, %s3015_s10   ;;  %s505_s22 = scalar_lea.sflag [#allocation7], %s504_s14 }
  0xf7   : > { %s2592_s23 = sshll.u32 %s506_s15, 3 }
  0xf8   : > { %s508_s13 = scalar_lea.vmem [#allocation6], %s2592_s23 }
  0xf9   : > { %2135 = dma.done.wait (%p3017_p5), %s505_s22, 128  }
  0xfa   : > { %2137 = vsyncadd (%p3017_p5), %s505_s22, 4294967168  ;;  %p3018_p2 = scmp.eq.s32.totalorder %s3014_s4, 0 }
  0xfc   : > { %2139 = dma.done.wait (%p3018_p2), [#allocation7], 16   ;;  %p3019_p8 = pmov %p3018_p2 }
  0xfd   : > { %p3020_p7 = pmov %p3018_p2 }
  0xfe   : > { %2141 = vsyncadd (%p3019_p8), [#allocation7], 4294967280 }
  0xff   : > { %2143 = dma.done.wait (%p3020_p7), [#allocation10], 1040   ;;  %p3021_p3 = pmov %p3018_p2 }
 0x100   : > { %p3022_p1 = pmov %p3018_p2 }
 0x101   : > { %2145 = vsyncadd (%p3021_p3), [#allocation10], 4294966256 }
 0x102   : > { %2147 = dma.done.wait (%p3022_p1), [#allocation13], 2048   ;;  %p3023_p12 = pmov %p3022_p1 }
 0x103   : > { %s571_s21 = scalar_lea.vmem [#allocation14], %s2592_s23  ;;  %s3024_s8 = sld [smem:[#allocation23_spill]] }
 0x104   : > { %2149 = vsyncadd (%p3023_p12), [#allocation13], 4294965248 }
 0x109   : > { %p1448_p13 = scmp.ne.s32.totalorder %s3024_s8, 0 }
 0x10a   : > { %vm581_vm0 = vcmask (!%p1448_p13), 261120   ;;  %v2211_v0 = vmov (!%p1448_p13), 0.0  }
 0x10b   : > { %580 = sbr.rel (%p1448_p13) target bundleno = 274 (0x112), region = 100  ;;  %582 = vst.msk [vmem:[#allocation2] sm:$0xff] (!%p1448_p13), %vm581_vm0, %v2211_v0 }
 0x112 PF: > { %s3025_s28 = sld [smem:[#allocation23_spill]]  ;;  %v592_v1 = vlaneseq  ;;  %v584_v4 = vld [vmem:[%s2582_s12] sm:$0xff]  ;;  %v585_v5 = vld [vmem:[%s2582_s12 + $0x8] sm:$0xff]  ;;  %v586_v6 = vld [vmem:[%s2582_s12 + $0x10] sm:$0xff]  ;;  %vm607_vm2 = vcmask 261120   ;;  %vm673_vm3 = vcmask 1041409  }
 0x113   : > { %v587_v7 = vld [vmem:[%s2582_s12 + $0x18] sm:$0xff]  ;;  %v588_v8 = vld [vmem:[%s2582_s12 + $0x20] sm:$0xff]  ;;  %v589_v10 = vld [vmem:[%s2582_s12 + $0x28] sm:$0xff]  ;;  %vm675_vm4 = vcmask 1042434   ;;  %vm677_vm5 = vcmask 1043459   ;;  %vm679_vm6 = vcmask 1044484  }
 0x114   : > { %v2614_v3 = vshrl.u32 %v592_v1, 7  ;;  %v590_v11 = vld [vmem:[%s2582_s12 + $0x30] sm:$0xff]  ;;  %v591_v12 = vld [vmem:[%s2582_s12 + $0x38] sm:$0xff]  ;;  %vm681_vm7 = vcmask 1045509   ;;  %vm683_vm8 = vcmask 1046534   ;;  %vm685_vm9 = vcmask 1047559  }
 0x118   : > { %s1449_s25 = sshll.u32 %s3025_s28, 3  ;;  %p1450_p10 = scmp.ne.s32.totalorder %s3025_s28, 3 }
 0x119   : > { %v594_v2 = vstv %s1449_s25  ;;  %s3026_s3 = sld [smem:[#allocation34_spill]] (!%p1450_p10)  ;;  %vm2213_vm10 = vmmov (!%p1450_p10), 0   ;;  %s3027_s25 = sld [smem:[#allocation36_spill]] (!%p1450_p10)  ;;  %vm806_vm11 = vcmask (!%p1450_p10), 523264  }
 0x11a   : > { %v595_v9 = vadd.s32 %v594_v2, %v2614_v3  ;;  %s3029_s10 = sld [smem:[#allocation37_spill]] (!%p1450_p10)  ;;  %s3030_s28 = sld [smem:[#allocation39_spill]] (!%p1450_p10) }
 0x11b   : > { %s3032_s8 = sld [smem:[#allocation38_spill]] (!%p1450_p10)  ;;  %s3033_s26 = sld [smem:[#allocation40_spill]] (!%p1450_p10) }
 0x11c   : > { %vm596_vm1 = vcmp.lt.s32.totalorder %v595_v9, 28  ;;  %s3034_s2 = sld [smem:[#allocation41_spill]] (!%p1450_p10) }
 0x11d   : > { %v599_v13 = vsel %vm596_vm1, %v584_v4, 0.0  ;;  %v600_v14 = vsel %vm596_vm1, %v585_v5, 0.0  ;;  %v601_v15 = vsel %vm596_vm1, %v586_v6, 0.0  ;;  %v602_v16 = vsel %vm596_vm1, %v587_v7, 0.0 }
 0x11e   : > { %v603_v17 = vsel %vm596_vm1, %v588_v8, 0.0  ;;  %v604_v18 = vsel %vm596_vm1, %v589_v10, 0.0  ;;  %v605_v19 = vsel %vm596_vm1, %v590_v11, 0.0  ;;  %v606_v20 = vsel %vm596_vm1, %v591_v12, 0.0 }
 0x11f   : > { %v608_v21 = vsel %vm607_vm2, %v599_v13, 0.0  ;;  %v615_v22 = vsel %vm607_vm2, %v600_v14, 0.0  ;;  %v622_v23 = vsel %vm607_vm2, %v601_v15, 0.0  ;;  %v629_v24 = vsel %vm607_vm2, %v602_v16, 0.0  ;;  %s3028_s9 = smov (!%p1450_p10), %s3027_s25 }
 0x120   : > { %v609_v25 = vrot.slane %v608_v21, 4  ;;  %v616_v26 = vrot.slane %v615_v22, 4  ;;  %v623_v27 = vrot.slane %v622_v23, 4  ;;  %v630_v28 = vrot.slane %v629_v24, 4  ;;  %s3031_s24 = smov (!%p1450_p10), %s3030_s28 }
 0x121   : > { %v636_v29 = vsel %vm607_vm2, %v603_v17, 0.0  ;;  %v643_v30 = vsel %vm607_vm2, %v604_v18, 0.0  ;;  %v650_v31 = vsel %vm607_vm2, %v605_v19, 0.0  ;;  %v657_v32 = vsel %vm607_vm2, %v606_v20, 0.0  ;;  %v664_v18 = vld [vmem:[#allocation2] sm:$0xff] }
 0x122   : > { %v610_v33 = vadd.f32 %v609_v25, %v608_v21  ;;  %v617_v34 = vadd.f32 %v616_v26, %v615_v22  ;;  %v624_v35 = vadd.f32 %v623_v27, %v622_v23  ;;  %v631_v36 = vadd.f32 %v630_v28, %v629_v24  ;;  %v697_v23 = vld [vmem:[%s3026_s3] sm:$0xff] (!%p1450_p10)  ;;  %v698_v24 = vld [vmem:[%s3026_s3 + $0x8] sm:$0xff] (!%p1450_p10)  ;;  %v699_v25 = vld [vmem:[%s3026_s3 + $0x10] sm:$0xff] (!%p1450_p10) }
 0x123   : > { %v637_v37 = vrot.slane %v636_v29, 4  ;;  %v644_v38 = vrot.slane %v643_v30, 4  ;;  %v651_v39 = vrot.slane %v650_v31, 4  ;;  %v658_v40 = vrot.slane %v657_v32, 4  ;;  %v700_v28 = vld [vmem:[%s3026_s3 + $0x18] sm:$0xff] (!%p1450_p10) }
 0x124   : > { %v611_v41 = vrot.slane %v610_v33, 2  ;;  %v618_v42 = vrot.slane %v617_v34, 2  ;;  %v625_v43 = vrot.slane %v624_v35, 2  ;;  %v632_v44 = vrot.slane %v631_v36, 2 }
 0x125   : > { %v638_v45 = vadd.f32 %v637_v37, %v636_v29  ;;  %v645_v46 = vadd.f32 %v644_v38, %v643_v30  ;;  %v652_v47 = vadd.f32 %v651_v39, %v650_v31  ;;  %v659_v48 = vadd.f32 %v658_v40, %v657_v32  ;;  %v701_v31 = vld [vmem:[%s3026_s3 + $0x20] sm:$0xff] (!%p1450_p10)  ;;  %v702_v32 = vld [vmem:[%s3026_s3 + $0x28] sm:$0xff] (!%p1450_p10)  ;;  %v703_v39 = vld [vmem:[%s3026_s3 + $0x30] sm:$0xff] (!%p1450_p10) }
 0x126   : > { %v612_v49 = vadd.f32 %v611_v41, %v610_v33  ;;  %v619_v50 = vadd.f32 %v618_v42, %v617_v34  ;;  %v626_v51 = vadd.f32 %v625_v43, %v624_v35  ;;  %v633_v52 = vadd.f32 %v632_v44, %v631_v36  ;;  %v791_v33 = vld [vmem:[%s3027_s25] sm:$0xff] (!%p1450_p10)  ;;  %v792_v34 = vld [vmem:[%s3028_s9 + $0x8] sm:$0xff] (!%p1450_p10)  ;;  %v793_v35 = vld [vmem:[%s3028_s9 + $0x10] sm:$0xff] (!%p1450_p10) }
 0x127   : > { %v639_v53 = vrot.slane %v638_v45, 2  ;;  %v646_v54 = vrot.slane %v645_v46, 2  ;;  %v653_v55 = vrot.slane %v652_v47, 2  ;;  %v660_v56 = vrot.slane %v659_v48, 2  ;;  %v794_v36 = vld [vmem:[%s3028_s9 + $0x18] sm:$0xff] (!%p1450_p10)  ;;  %v795_v42 = vld [vmem:[%s3028_s9 + $0x20] sm:$0xff] (!%p1450_p10) }
 0x128   : > { %v613_v57 = vrot.slane %v612_v49, 1  ;;  %v620_v58 = vrot.slane %v619_v50, 1  ;;  %v627_v59 = vrot.slane %v626_v51, 1  ;;  %v634_v60 = vrot.slane %v633_v52, 1  ;;  %v704_v40 = vld [vmem:[%s3026_s3 + $0x38] sm:$0xff] (!%p1450_p10)  ;;  %v796_v43 = vld [vmem:[%s3028_s9 + $0x28] sm:$0xff] (!%p1450_p10) }
 0x129   : > { %v640_v61 = vadd.f32 %v639_v53, %v638_v45  ;;  %v647_v62 = vadd.f32 %v646_v54, %v645_v46  ;;  %v654_v63 = vadd.f32 %v653_v55, %v652_v47  ;;  %v661_v0 = vadd.f32 %v660_v56, %v659_v48  ;;  %v705_v45 = vld [vmem:[%s3026_s3 + $0x40] sm:$0xff] (!%p1450_p10)  ;;  %v706_v46 = vld [vmem:[%s3026_s3 + $0x48] sm:$0xff] (!%p1450_p10)  ;;  %v711_v55 = vld [vmem:[%s3026_s3 + $0x70] sm:$0xff] (!%p1450_p10) }
 0x12a   : > { %v614_v1 = vadd.f32 %v613_v57, %v612_v49  ;;  %v621_v2 = vadd.f32 %v620_v58, %v619_v50  ;;  %v628_v4 = vadd.f32 %v627_v59, %v626_v51  ;;  %v635_v5 = vadd.f32 %v634_v60, %v633_v52  ;;  %v707_v49 = vld [vmem:[%s3026_s3 + $0x50] sm:$0xff] (!%p1450_p10)  ;;  %v708_v50 = vld [vmem:[%s3026_s3 + $0x58] sm:$0xff] (!%p1450_p10)  ;;  %v709_v52 = vld [vmem:[%s3026_s3 + $0x60] sm:$0xff] (!%p1450_p10) }
 0x12b   : > { %v641_v6 = vrot.slane %v640_v61, 1  ;;  %v648_v7 = vrot.slane %v647_v62, 1  ;;  %v655_v8 = vrot.slane %v654_v63, 1  ;;  %v662_v9 = vrot.slane %v661_v0, 1  ;;  %v710_v53 = vld [vmem:[%s3026_s3 + $0x68] sm:$0xff] (!%p1450_p10)  ;;  %v712_v56 = vld [vmem:[%s3026_s3 + $0x78] sm:$0xff] (!%p1450_p10) }
 0x12c   : > { %v674_v10 = vsel %vm673_vm3, %v621_v2, %v614_v1  ;;  %v2212_v26 = vmov (!%p1450_p10), 0.0|0.0   ;;  %v1631_v27 = vpack.c.bf16 (!%p1450_p10), %v698_v24, %v697_v23  ;;  %v2214_v29 = vmov (!%p1450_p10), 0.0   ;;  %v696_v58 = vld [vmem:[%s508_s13] sm:$0xff] (!%p1450_p10)  ;;  %v798_v60 = vld [vmem:[%s3028_s9 + $0x38] sm:$0xff] (!%p1450_p10) }
 0x12d   : > { %v642_v11 = vadd.f32 %v641_v6, %v640_v61  ;;  %v649_v12 = vadd.f32 %v648_v7, %v647_v62  ;;  %v656_v13 = vadd.f32 %v655_v8, %v654_v63  ;;  %v676_v14 = vsel %vm675_vm4, %v628_v4, %v674_v10  ;;  %1630 = vmatprep.subr.bf16.mxu0 (!%p1450_p10), %v2212_v26  ;;  %v797_v59 = vld [vmem:[%s3028_s9 + $0x30] sm:$0xff] (!%p1450_p10)  ;;  %v889_v62 = vld [vmem:[#allocation11 + $0x8] sm:$0xff] (!%p1450_p10)  ;;  %v1451_v1 = vld [vmem:[#allocation8] ss:$0 sm:$0xff] (!%p1450_p10) }
 0x12e   : > { %v663_v15 = vadd.f32 %v662_v9, %v661_v0  ;;  %v678_v16 = vsel %vm677_vm5, %v635_v5, %v676_v14  ;;  %1573 = vmatprep.mubr.msk.f32.mxu0 (!%p1450_p10), %vm2213_vm10, %v2214_v29  ;;  %1654 = vmatprep.subr.bf16.mxu1 (!%p1450_p10), %v2212_v26  ;;  %v1634_v30 = vpack.c.bf16 (!%p1450_p10), %v700_v28, %v699_v25  ;;  %v891_v63 = vld [vmem:[#allocation11 + $0x18] sm:$0xff] (!%p1450_p10)  ;;  %v888_v2 = vld [vmem:[#allocation11] sm:$0xff] (!%p1450_p10)  ;;  %v890_v4 = vld [vmem:[#allocation11 + $0x10] sm:$0xff] (!%p1450_p10) }
 0x12f   : > { %v680_v17 = vsel %vm679_vm6, %v642_v11, %v678_v16  ;;  %693 = sbr.rel (%p1450_p10) target bundleno = 1424 (0x590), region = 104  ;;  %1592 = vmatprep.mubr.msk.f32.mxu1 (!%p1450_p10), %vm2213_vm10, %v2214_v29  ;;  %1632 = vmatpush3.bf16.msra.mxu0 (!%p1450_p10), %v1631_v27  ;;  %v1637_v37 = vpack.c.bf16 (!%p1450_p10), %v702_v32, %v701_v31  ;;  %v1655_v38 = vpack.c.bf16 (!%p1450_p10), %v792_v34, %v791_v33  ;;  %v893_v6 = vld [vmem:[#allocation11 + $0x28] sm:$0xff] (!%p1450_p10)  ;;  %v895_v7 = vld [vmem:[#allocation11 + $0x38] sm:$0xff] (!%p1450_p10)  ;;  %v894_v14 = vld [vmem:[#allocation11 + $0x30] sm:$0xff] (!%p1450_p10) }
 0x130   : > { %v682_v19 = vsel %vm681_vm7, %v649_v12, %v680_v17  ;;  %1633 = vmatprep.subr.bf16.mxu0 (!%p1450_p10), %v2212_v26  ;;  %v1658_v41 = vpack.c.bf16 (!%p1450_p10), %v794_v36, %v793_v35  ;;  %v1640_v44 = vpack.c.bf16 (!%p1450_p10), %v704_v40, %v703_v39  ;;  %v1661_v47 = vpack.c.bf16 (!%p1450_p10), %v796_v43, %v795_v42  ;;  %v881_v16 = vld [vmem:[%s3029_s10 + $0x8] sm:$0xff] (!%p1450_p10)  ;;  %v883_v17 = vld [vmem:[%s3029_s10 + $0x18] sm:$0xff] (!%p1450_p10)  ;;  %v1078_v24 = vld [vmem:[%s3031_s24 + $0x90] sm:$0xff] (!%p1450_p10) }
 0x131   : > { %v684_v20 = vsel %vm683_vm8, %v656_v13, %v682_v19  ;;  %1656 = vmatpush3.bf16.msra.mxu1 (!%p1450_p10), %v1655_v38  ;;  %v1643_v48 = vpack.c.bf16 (!%p1450_p10), %v706_v46, %v705_v45  ;;  %v1646_v51 = vpack.c.bf16 (!%p1450_p10), %v708_v50, %v707_v49  ;;  %v1649_v54 = vpack.c.bf16 (!%p1450_p10), %v710_v53, %v709_v52  ;;  %v892_v13 = vld [vmem:[#allocation11 + $0x20] sm:$0xff] (!%p1450_p10)  ;;  %v1061_v23 = vld [vmem:[%s3031_s24 + $0x8] sm:$0xff] (!%p1450_p10)  ;;  %v1082_v38 = vld [vmem:[%s3031_s24 + $0xb0] sm:$0xff] (!%p1450_p10) }
 0x132   : > { %v686_v21 = vsel %vm685_vm9, %v663_v15, %v684_v20  ;;  %1657 = vmatprep.subr.bf16.mxu1 (!%p1450_p10), %v2212_v26  ;;  %v1652_v57 = vpack.c.bf16 (!%p1450_p10), %v712_v56, %v711_v55  ;;  %v1664_v61 = vpack.c.bf16 (!%p1450_p10), %v798_v60, %v797_v59  ;;  %v1666_v0 = vpack.c.bf16 (!%p1450_p10), %v891_v63, %v889_v62  ;;  %v1076_v19 = vld [vmem:[%s3030_s28 + $0x80] sm:$0xff] (!%p1450_p10)  ;;  %v1077_v20 = vld [vmem:[%s3031_s24 + $0x88] sm:$0xff] (!%p1450_p10)  ;;  %v1079_v25 = vld [vmem:[%s3031_s24 + $0x98] sm:$0xff] (!%p1450_p10) }
 0x133   : > { %v688_v22 = vadd.f32 %v686_v21, %v664_v18  ;;  %1635 = vmatpush3.bf16.msra.mxu0 (!%p1450_p10), %v1634_v30  ;;  %v1668_v10 = vpack.c.bf16 (!%p1450_p10), %v890_v4, %v888_v2  ;;  %v1670_v12 = vpack.c.bf16 (!%p1450_p10), %v895_v7, %v893_v6  ;;  %v1672_v15 = vpack.c.bf16 (!%p1450_p10), %v894_v14, %v892_v13  ;;  %v1060_v21 = vld [vmem:[%s3031_s24] sm:$0xff] (!%p1450_p10)  ;;  %v1062_v30 = vld [vmem:[%s3031_s24 + $0x10] sm:$0xff] (!%p1450_p10)  ;;  %v1063_v31 = vld [vmem:[%s3031_s24 + $0x18] sm:$0xff] (!%p1450_p10) }
 0x134   : > { %1636 = vmatprep.subr.bf16.mxu0 (!%p1450_p10), %v2212_v26  ;;  %v1674_v18 = vpack.c.bf16 (!%p1450_p10), %v883_v17, %v881_v16  ;;  %v1684_v27 = vpack.c.bf16 (!%p1450_p10), %v1061_v23, %v1060_v21  ;;  %v1686_v28 = vpack.c.bf16 (!%p1450_p10), %v1079_v25, %v1078_v24  ;;  %v1080_v32 = vld [vmem:[%s3031_s24 + $0xa0] sm:$0xff] (!%p1450_p10)  ;;  %v1081_v33 = vld [vmem:[%s3031_s24 + $0xa8] sm:$0xff] (!%p1450_p10)  ;;  %v1688_v34 = vpack.c.bf16 (!%p1450_p10), %v1063_v31, %v1062_v30  ;;  %v1083_v39 = vld [vmem:[%s3031_s24 + $0xb8] sm:$0xff] (!%p1450_p10) }
 0x135   : > { %689 = vst.msk [vmem:[#allocation2] sm:$0xff] %vm607_vm2, %v688_v22  ;;  %1659 = vmatpush3.bf16.msra.mxu1 (!%p1450_p10), %v1658_v41  ;;  %v1682_v22 = vpack.c.bf16 (!%p1450_p10), %v1077_v20, %v1076_v19  ;;  %v1690_v35 = vpack.c.bf16 (!%p1450_p10), %v1081_v33, %v1080_v32  ;;  %v1064_v36 = vld [vmem:[%s3031_s24 + $0x20] sm:$0xff] (!%p1450_p10)  ;;  %v1694_v41 = vpack.c.bf16 (!%p1450_p10), %v1083_v39, %v1082_v38  ;;  %v1066_v42 = vld [vmem:[%s3031_s24 + $0x30] sm:$0xff] (!%p1450_p10)  ;;  %v1067_v43 = vld [vmem:[%s3031_s24 + $0x38] sm:$0xff] (!%p1450_p10) }
 0x136   : > { %1660 = vmatprep.subr.bf16.mxu1 %v2212_v26  ;;  %v1085_v45 = vld [vmem:[%s3031_s24 + $0xc8] sm:$0xff]  ;;  %v1696_v46 = vpack.c.bf16 %v1067_v43, %v1066_v42  ;;  %v1086_v50 = vld [vmem:[%s3031_s24 + $0xd0] sm:$0xff]  ;;  %v1071_v55 = vld [vmem:[%s3031_s24 + $0x58] sm:$0xff]  ;;  %v1052_v42 = vsub.s32 1, %v2614_v3 }
 0x137   : > { %1638 = vmatpush3.bf16.msra.mxu0 %v1637_v37  ;;  %v1065_v37 = vld [vmem:[%s3031_s24 + $0x28] sm:$0xff]  ;;  %v1088_v56 = vld [vmem:[%s3031_s24 + $0xe0] sm:$0xff]  ;;  %v1452_v62 = vld [vmem:[#allocation9] ss:$0 sm:$0xff] }
 0x138   : > { %1639 = vmatprep.subr.bf16.mxu0 %v2212_v26  ;;  %v1692_v40 = vpack.c.bf16 %v1065_v37, %v1064_v36  ;;  %v1069_v49 = vld [vmem:[%s3031_s24 + $0x48] sm:$0xff]  ;;  %v880_v60 = vld [vmem:[%s3029_s10] sm:$0xff]  ;;  %v1091_v16 = vld [vmem:[%s3031_s24 + $0xf8] sm:$0xff] }
 0x139   : > { %1662 = vmatpush3.bf16.msra.mxu1 %v1661_v47  ;;  %v885_v63 = vld [vmem:[%s3029_s10 + $0x28] sm:$0xff]  ;;  %v884_v7 = vld [vmem:[%s3029_s10 + $0x20] sm:$0xff]  ;;  %v1173_v24 = vld [vmem:[#allocation12 + $0x18] sm:$0xff] }
 0x13a   : > { %1663 = vmatprep.subr.bf16.mxu1 %v2212_v26  ;;  %v1073_v13 = vld [vmem:[%s3031_s24 + $0x68] sm:$0xff]  ;;  %v1170_v20 = vld [vmem:[#allocation12] sm:$0xff]  ;;  %v1177_v32 = vld [vmem:[#allocation12 + $0x38] sm:$0xff] }
 0x13b   : > { %1641 = vmatpush3.bf16.msra.mxu0 %v1640_v44  ;;  %v1084_v44 = vld [vmem:[%s3031_s24 + $0xc0] sm:$0xff]  ;;  %v1176_v31 = vld [vmem:[#allocation12 + $0x30] sm:$0xff]  ;;  %v1181_v38 = vld [vmem:[#allocation12 + $0x58] sm:$0xff] }
 0x13c   : > { %1642 = vmatprep.subr.bf16.mxu0 %v2212_v26  ;;  %v1698_v47 = vpack.c.bf16 %v1085_v45, %v1084_v44  ;;  %v1171_v21 = vld [vmem:[#allocation12 + $0x8] sm:$0xff]  ;;  %v1724_v33 = vpack.c.bf16 %v1177_v32, %v1176_v31  ;;  %v1180_v37 = vld [vmem:[#allocation12 + $0x50] sm:$0xff] }
 0x13d   : > { %1665 = vmatpush3.bf16.msra.mxu1 %v1664_v61  ;;  %v882_v61 = vld [vmem:[%s3029_s10 + $0x10] sm:$0xff]  ;;  %v1715_v23 = vpack.c.bf16 %v1171_v21, %v1170_v20  ;;  %v1730_v39 = vpack.c.bf16 %v1181_v38, %v1180_v37 }
 0x13e   : > { %1667 = vmatprep.subr.bf16.mxu1 %v1666_v0  ;;  %v887_v0 = vld [vmem:[%s3029_s10 + $0x38] sm:$0xff]  ;;  %v1676_v2 = vpack.c.bf16 %v882_v61, %v880_v60 }
 0x13f   : > { %1644 = vmatpush3.bf16.msra.mxu0 %v1643_v48  ;;  %v1068_v48 = vld [vmem:[%s3031_s24 + $0x40] sm:$0xff]  ;;  %v1678_v6 = vpack.c.bf16 %v887_v0, %v885_v63 }
 0x140   : > { %1645 = vmatprep.subr.bf16.mxu0 %v2212_v26  ;;  %v1700_v52 = vpack.c.bf16 %v1069_v49, %v1068_v48 }
 0x143   : > { %1647 = vmatpush3.bf16.msra.mxu0 %v1646_v51  ;;  %v1087_v51 = vld [vmem:[%s3031_s24 + $0xd8] sm:$0xff] }
 0x144   : > { %1648 = vmatprep.subr.bf16.mxu0 %v2212_v26  ;;  %v1702_v53 = vpack.c.bf16 %v1087_v51, %v1086_v50  ;;  %v1182_v51 = vld [vmem:[#allocation12 + $0x60] sm:$0xff] }
 0x147   : > { %1650 = vmatpush3.bf16.msra.mxu0 %v1649_v54  ;;  %v1070_v54 = vld [vmem:[%s3031_s24 + $0x50] sm:$0xff] }
 0x148   : > { %1651 = vmatprep.subr.bf16.mxu0 %v2212_v26 }
 0x14b   : > { %1653 = vmatpush3.bf16.msra.mxu0 %v1652_v57  ;;  %v1089_v57 = vld [vmem:[%s3031_s24 + $0xe8] sm:$0xff] }
 0x14c   : > { %1683 = vmatprep.subr.bf16.mxu0 %v1682_v22  ;;  %v1706_v59 = vpack.c.bf16 %v1089_v57, %v1088_v56  ;;  %v1172_v22 = vld [vmem:[#allocation12 + $0x10] sm:$0xff]  ;;  %v1456_v57 = vld [vmem:[%s3033_s26] ss:$0 sm:$0xff] }
 0x14d   : > { %v1718_v25 = vpack.c.bf16 %v1173_v24, %v1172_v22 }
 0x14e   : > { %1574 = vmatmul.mubr.f32.vlgmr.msra.gmra.mrb[0].mxu0 %v696_v58  ;;  %v1704_v58 = vpack.c.bf16 %v1071_v55, %v1070_v54  ;;  %v1184_v54 = vld [vmem:[#allocation12 + $0x70] sm:$0xff]  ;;  %v1185_v55 = vld [vmem:[#allocation12 + $0x78] sm:$0xff] }
 0x14f   : > { %1685 = vmatpush3.bf16.msra.mxu0 %v1684_v27  ;;  %v1174_v27 = vld [vmem:[#allocation12 + $0x20] sm:$0xff] }
 0x150   : > { %1687 = vmatprep.subr.bf16.mxu0 %v1686_v28  ;;  %v1175_v28 = vld [vmem:[#allocation12 + $0x28] sm:$0xff] }
 0x151   : > { %v1721_v30 = vpack.c.bf16 %v1175_v28, %v1174_v27 }
 0x153   : > { %1689 = vmatpush3.bf16.msra.mxu0 %v1688_v34  ;;  %v1178_v34 = vld [vmem:[#allocation12 + $0x40] sm:$0xff] }
 0x154   : > { %1691 = vmatprep.subr.bf16.mxu0 %v1690_v35  ;;  %v1179_v35 = vld [vmem:[#allocation12 + $0x48] sm:$0xff] }
 0x155   : > { %v1727_v36 = vpack.c.bf16 %v1179_v35, %v1178_v34 }
 0x157   : > { %1693 = vmatpush3.bf16.msra.mxu0 %v1692_v40  ;;  %v1048_v40 = vsub.s32 0, %v2614_v3  ;;  %v1736_v3 = vpack.c.bf16 %v1185_v55, %v1184_v54 }
 0x158   : > { %1695 = vmatprep.subr.bf16.mxu0 %v1694_v41  ;;  %v1044_v41 = vld [vmem:[%s3032_s8] sm:$0x3] }
 0x159   : > { %v1049_v43 = vrot.slane %v1044_v41, %v1048_v40  ;;  %v1053_v44 = vrot.slane %v1044_v41, %v1052_v42 }
 0x15b   : > { %1697 = vmatpush3.bf16.msra.mxu0 %v1696_v46 }
 0x15c   : > { %1699 = vmatprep.subr.bf16.mxu0 %v1698_v47 }
 0x15f   : > { %1701 = vmatpush3.bf16.msra.mxu0 %v1700_v52  ;;  %v1183_v52 = vld [vmem:[#allocation12 + $0x68] sm:$0xff] }
 0x160   : > { %1703 = vmatprep.subr.bf16.mxu0 %v1702_v53  ;;  %v1733_v53 = vpack.c.bf16 %v1183_v52, %v1182_v51 }
 0x163   : > { %1705 = vmatpush3.bf16.msra.mxu0 %v1704_v58 }
 0x164   : > { %1707 = vmatprep.subr.bf16.mxu0 %v1706_v59 }
 0x221   : > { %v786_v5 = vpop.f32.mrb[0].mxu0 }
 0x222   : > { %v787_v8 = vadd.f32 %v1451_v1, %v786_v5  ;;  %v1575_v9 = vpop.f32.mrb[1].mxu0 }
 0x224   : > { %v790_v11 = vmax.f32 %v787_v8, 0.0  ;;  %v886_v8 = vld [vmem:[%s3029_s10 + $0x30] sm:$0xff] }
 0x225   : > { %v1680_v9 = vpack.c.bf16 %v886_v8, %v884_v7 }
 0x226   : > { %1593 = vmatmul.mubr.msk.f32.vlgmr.msra.gmra.mrb[0].mxu1 %vm806_vm11, %v790_v11 }
 0x227   : > { %1669 = vmatpush1.bf16.msra.mxu1 %v1668_v10  ;;  %963 = vmatprep.mubr.f32.mxu1 %v2214_v29  ;;  %v694_v10 = vld [vmem:[#allocation2] sm:$0xff] }
 0x228   : > { %1671 = vmatprep.subr.bf16.mxu1 %v1670_v12  ;;  %v695_v11 = vmul.f32 0.035714287, %v694_v10  ;;  %v1072_v12 = vld [vmem:[%s3031_s24 + $0x60] sm:$0xff] }
 0x229   : > { %v1708_v14 = vpack.c.bf16 %v1073_v13, %v1072_v12 }
 0x22b   : > { %1673 = vmatpush1.bf16.msra.mxu1 %v1672_v15  ;;  %1709 = vmatpush3.bf16.msra.mxu0 %v1708_v14  ;;  %v1090_v15 = vld [vmem:[%s3031_s24 + $0xf0] sm:$0xff] }
 0x22c   : > { %1675 = vmatprep.subr.bf16.mxu1 %v1674_v18  ;;  %v1710_v17 = vpack.c.bf16 %v1091_v16, %v1090_v15  ;;  %v1075_v18 = vld [vmem:[%s3031_s24 + $0x78] sm:$0xff] }
 0x22e   : > { %1711 = vmatprep.subr.bf16.mxu0 %v1710_v17 }
 0x2f9   : > { %v876_v1 = vpop.f32.mrb[0].mxu1 }
 0x2fa   : > { %v877_v4 = vadd.f32 %v1452_v62, %v876_v1  ;;  %v1594_v5 = vpop.f32.mrb[1].mxu1  ;;  %v1457_v62 = vld [vmem:[%s3034_s2] ss:$0 sm:$0xff] }
 0x2fc   : > { %1454 = vmatmul.mubr.msk.f32.vlgmr.msra.gmra.mrb[2].mxu1 %vm607_vm2, %v877_v4 }
 0x2fd   : > { %1677 = vmatpush1.bf16.msra.mxu1 %v1676_v2  ;;  %1037 = vmatprep.mubr.f32.mxu1 %v2214_v29 }
 0x2fe   : > { %1679 = vmatprep.subr.bf16.mxu1 %v1678_v6 }
 0x301   : > { %1681 = vmatpush1.bf16.msra.mxu1 %v1680_v9 }
 0x302   : > { %1714 = vmatprep.subr.bf16.mxu1 %v2212_v26 }
 0x304   : > { %1455 = vmatmul.mubr.msk.f32.vlgmr.msra.gmra.mrb[2].mxu1 %vm607_vm2, %v695_v11 }
 0x305   : > { %1627 = vmatprep.mubr.msk.f32.mxu1 %vm2213_vm10, %v2214_v29  ;;  %v1074_v29 = vld [vmem:[%s3031_s24 + $0x70] sm:$0xff]  ;;  %1716 = vmatpush3.bf16.msra.mxu1 %v1715_v23 }
 0x306   : > { %v1712_v19 = vpack.c.bf16 %v1075_v18, %v1074_v29  ;;  %1717 = vmatprep.subr.bf16.mxu1 %v2212_v26 }
 0x308   : > { %1713 = vmatpush3.bf16.msra.mxu0 %v1712_v19 }
 0x309   : > { %1719 = vmatpush3.bf16.msra.mxu1 %v1718_v25 }
 0x30a   : > { %1720 = vmatprep.subr.bf16.mxu1 %v2212_v26 }
 0x30d   : > { %1722 = vmatpush3.bf16.msra.mxu1 %v1721_v30 }
 0x30e   : > { %1723 = vmatprep.subr.bf16.mxu1 %v2212_v26 }
 0x311   : > { %1725 = vmatpush3.bf16.msra.mxu1 %v1724_v33 }
 0x312   : > { %1726 = vmatprep.subr.bf16.mxu1 %v2212_v26 }
 0x315   : > { %1728 = vmatpush3.bf16.msra.mxu1 %v1727_v36 }
 0x316   : > { %1729 = vmatprep.subr.bf16.mxu1 %v2212_v26 }
 0x319   : > { %1731 = vmatpush3.bf16.msra.mxu1 %v1730_v39 }
 0x31a   : > { %1732 = vmatprep.subr.bf16.mxu1 %v2212_v26 }
 0x31d   : > { %1734 = vmatpush3.bf16.msra.mxu1 %v1733_v53 }
 0x31e   : > { %1735 = vmatprep.subr.bf16.mxu1 %v2212_v26 }
 0x321   : > { %1737 = vmatpush3.bf16.msra.mxu1 %v1736_v3 }
 0x3d7   : > { %v1039_v45 = vpop.f32.mrb[2].mxu1 }
 0x3d8   : > { %v1056_v46 = vadd.f32 %v1049_v43, %v1039_v45  ;;  %v1041_v47 = vpop.f32.mrb[3].mxu1 }
 0x3d9   : > { %v1057_v48 = vadd.f32 %v1053_v44, %v1041_v47 }
 0x3da   : > { %v1058_v50 = vmax.f32 %v1056_v46, 0.0 }
 0x3db   : > { %v1059_v49 = vmax.f32 %v1057_v48, 0.0 }
 0x3dd   : > { %1163 = vmatprep.mubr.f32.mxu0 %v1059_v49 }
 0x3de   : > { %1164 = vmatmul.mubr.f32.vlgmr.msra.gmra.mrb[2].mxu0 %v1058_v50 }
 0x4b1   : > { %v1521_v56 = vpop.f32.mrb[2].mxu0 }
 0x4b2   : > { %v1522_v58 = vpop.f32.mrb[3].mxu0 }
 0x4b3   : > { %v1523_v59 = vadd.f32 %v1522_v58, %v1521_v56 }
 0x4b5   : > { %v1166_v60 = vadd.f32 %v1523_v59, %v1456_v57 }
 0x4b7   : > { %v1169_v61 = vmax.f32 %v1166_v60, 0.0 }
 0x4b9   : > { %1628 = vmatmul.mubr.f32.vlgmr.msra.gmra.mrb[4].mxu1 %v1169_v61 }
 0x58c   : > { %v1259_v26 = vpop.f32.mrb[4].mxu1 }
 0x58d   : > { %v1260_v63 = vadd.f32 %v1457_v62, %v1259_v26  ;;  %v1629_v0 = vpop.f32.mrb[5].mxu1 }
 0x58f   : > { %1263 = vst [vmem:[%s571_s21] sm:$0xff] %v1260_v63 }
 0x590 PF: > { %s3035_s12 = sld [smem:[#allocation24_spill]]  ;;  %s3037_s4 = sld [smem:[#allocation31_spill]] }
 0x591   : > { %s3038_s8 = sld [smem:[#allocation42_spill]]  ;;  %s1278_s25 = sshll.u32 %s571_s21, 4  ;;  %s1279_s25 = int_to_ptr.vmem [resolvable:$true] %s1278_s25 }
 0x592   : > { %s1265_s26 = scalar_lea.sflag [#allocation5], %s506_s15  ;;  %s2058_s19 = scalar_lea.vmem %s1279_s25, 128 }
 0x593   : > { %p2059_p0 = scmp.ne.s32.totalorder %s1279_s25, %s2058_s19  ;;  %s2215_s6 = smov [#allocation14]  }
 0x594   : > { %s2062_s2 = sshll.u32 %s2215_s6, 4  ;;  %s2063_s2 = int_to_ptr.vmem [resolvable:$false] %s2062_s2 }
 0x595   : > { %s2064_s0 = scalar_lea.vmem %s2063_s2, 256  ;;  %p2065_p6 = scmp.lt.s32.totalorder %s1279_s25, %s2063_s2 }
 0x596   : > { %s1459_s20 = sshll.u32 %s3035_s12, 7  ;;  %p3039_p11 = scmp.ne.s32.totalorder %s3037_s4, 0 }
 0x597   : > { %s2878_s28 = scalar_lea.hbm %s3038_s8, %s1459_s20  ;;  %p2066_p5 = scmp.lt.s32.totalorder %s2064_s0, %s2058_s19 }
 0x598   : > { %p2060_p4 = pnand %p2059_p0, %p3039_p11 }
 0x599   : > { %p2067_p2 = por %p2066_p5, %p2065_p6 }
 0x59a   : > { %p2061_p9 = pneg %p2060_p4 }
 0x59c   : > { %p2068_p8 = pnand %p2067_p2, %p2061_p9 }
 0x59e   : > { %2071 = shalt.err (!%p2068_p8)
}
 0x59f   : > { %s2072_s15 = scalar_lea.hbm %s2878_s28, 128  ;;  %s2076_s12 = scalar_lea.hbm %s3038_s8, 256 }
 0x5a0   : > { %p2073_p7 = scmp.ne.s32.totalorder %s2878_s28, %s2072_s15  ;;  %p2077_p12 = scmp.lt.u32.totalorder %s2878_s28, %s3038_s8 }
 0x5a1   : > { %p2078_p13 = scmp.lt.u32.totalorder %s2076_s12, %s2072_s15  ;;  %p2080_p0 = scmp.lt.u32.totalorder %s2072_s15, %s2878_s28 }
 0x5a2   : > { %p2074_p3 = pnand %p2073_p7, %p3039_p11 }
 0x5a3   : > { %p2079_p10 = por %p2078_p13, %p2077_p12 }
 0x5a4   : > { %p2075_p1 = pneg %p2074_p3 }
 0x5a5   : > { %p2081_p4 = por %p2080_p0, %p2079_p10 }
 0x5a7   : > { %p2082_p9 = pnand %p2081_p4, %p2075_p1 }
 0x5a9   : > { %2085 = shalt.err (!%p2082_p9)
}
 0x5aa   : > { %1759 = dma.vmem_to_hbm [thread:$0]  (%p3039_p11), %s1279_s25, 128, %s2878_s28, %s1265_s26  }
 0x5ab PF: > { %s3040_s0 = sld [smem:[#allocation21_spill]]  ;;  %s3041_s14 = sld [smem:[#allocation32_spill]] }
 0x5ac   : > { %p1786_p6 = scmp.ge.s32.totalorder %s2196_s18, 2 }
 0x5b1   : > { %s1290_s22 = sand.u32 1, %s3040_s0   ;;  %p3042_p5 = scmp.ne.s32.totalorder %s3041_s14, 0 }
 0x5b2   : > { %s1291_s19 = scalar_lea.sflag [#allocation5], %s1290_s22 }
 0x5b3   : > { %p1775_p2 = pnand %p1786_p6, %p3042_p5 }
 0x5b5   : > { %2151 = dma.done.wait (!%p1775_p2), %s1291_s19, 128  }
 0x5b6   : > { %2153 = vsyncadd (!%p1775_p2), %s1291_s19, 4294967168  ;;  %s34_s18 = sadd.s32 1, %s2196_s18   ;;  %s3043_s25 = sld [smem:[#allocation22_spill]] }
 0x5b7   : > { %p31_p8 = scmp.ge.s32.totalorder %s34_s18, 10   ;;  %s3044_s6 = sld [smem:[#allocation28_spill]] }
 0x5b8   : > { %s3045_s4 = sld [smem:[#allocation29_spill]]  ;;  %s3046_s2 = sld [smem:[#allocation26_spill]] }
 0x5b9   : > { %s3047_s23 = sld [smem:[#allocation27_spill]]  ;;  %s3048_s26 = smov %s2164_s27 }
 0x5ba   : > { %s3050_s28 = smov %s2172_s29  ;;  %s3051_s29 = smov %s2176_s30 }
 0x5bb   : > { %s3053_s14 = smov %s2188_s16  ;;  %s3054_s15 = smov %s2192_s17 }
 0x5bc   :  { %33 = sbr.rel (!%p31_p8) target bundleno = 24 (0x18), region = 154 }
 0x5bd   : > { %s3049_s27 = smov %s3044_s6 }
 0x5be   : > { %s3052_s30 = smov %s3045_s4  ;;  %s3055_s16 = smov %s3046_s2 }
 0x5bf   : > { %s3056_s17 = smov %s3047_s23 }
 0x5c3   :  { %1296 = vsyncpa [#allocation4], 1 }
 0x5c4   :  { %1298 = vsyncpa [#allocation4 + $0x1], 1 }
 0x5c5   :  { %1299 = vsyncpa [#allocation7], 1 }
 0x5c6   :  { %1301 = vsyncpa [#allocation7 + $0x1], 1 }
 0x5c7   :  { %1302 = vsyncpa [#allocation10], 1 }
 0x5c8   :  { %1303 = vsyncpa [#allocation13], 1 }
 0x5c9   :  { %1304 = vsyncpa [#allocation5], 1 }
 0x5ca   :  { %1306 = vsyncpa [#allocation5 + $0x1], 1 }

</bundles_post_ra>
